<compile_context>
chip_gen: v6e
topology: v6e:2x2x1
jax: 0.10.0
libtpu: 0.0.40
codegen_flags: <defaults>
</compile_context>

<pallas_src>
import functools
import math

import jax
import jax.numpy as jnp
from jax.experimental import pallas as pl
from jax.experimental.pallas import tpu as pltpu


def _rup(n, m):
    return ((n + m - 1) // m) * m


# ----------------------------- fused Pallas kernel ------------------------- #
def _fused_siren_kernel(x_ref, *refs, apply_sine):
    """All layers of net1+net2 in one kernel; activations stay on-chip."""
    n_layers = len(apply_sine)
    o_ref = refs[2 * n_layers]
    h = x_ref[...]
    for i, sine in enumerate(apply_sine):
        w = refs[2 * i][...]
        b = refs[2 * i + 1][...]
        # w0 is already folded into (w, b) for sine layers.
        y = jnp.dot(h, w, preferred_element_type=jnp.float32) + b
        h = jnp.sin(y) if sine else y
    o_ref[...] = h.astype(o_ref.dtype)


def _fused_call(fused_layers, x2d):
    """x2d: (M, D) f32 -> (M_pad, N_out_pad) f32 via one pallas_call."""
    M, D = x2d.shape
    din_pad = fused_layers[0][0].shape[0]
    nout_pad = fused_layers[-1][0].shape[1]

    # Row tiling: one "parallel" grid axis over rows; weights use a constant block
    # index so they stay VMEM-resident across the whole grid.
    if M <= 256:
        tile_m = max(_rup(M, 8), 8)
        m_pad = tile_m
    else:
        tile_m = 256
        m_pad = _rup(M, tile_m)

    x_p = x2d
    if (m_pad, din_pad) != (M, D):
        x_p = jnp.pad(x2d, ((0, m_pad - M), (0, din_pad - D)))

    apply_sine = tuple(bool(s) for (_, _, s) in fused_layers)
    kernel = functools.partial(_fused_siren_kernel, apply_sine=apply_sine)

    in_specs = [pl.BlockSpec((tile_m, din_pad), lambda i: (i, 0))]
    args = [x_p]
    for (w, b, _) in fused_layers:
        in_specs.append(pl.BlockSpec(w.shape, lambda i: (0, 0)))
        in_specs.append(pl.BlockSpec(b.shape, lambda i: (0, 0)))
        args.append(w)
        args.append(b)

    return pl.pallas_call(
        kernel,
        out_shape=jax.ShapeDtypeStruct((m_pad, nout_pad), jnp.float32),
        grid_spec=pltpu.PrefetchScalarGridSpec(
            num_scalar_prefetch=0,
            grid=(m_pad // tile_m,),
            in_specs=in_specs,
            out_specs=pl.BlockSpec((tile_m, nout_pad), lambda i: (i, 0)),
        ),
        compiler_params=pltpu.CompilerParams(
            dimension_semantics=("parallel",)),
    )(*args)


# --------------------------- parameter creation ----------------------------- #
def _init_siren_linear(key, dim_in, dim_out, w0, c, is_first):
    # Matches siren-pytorch init_: U(-w_std, w_std)
    w_std = (1.0 / dim_in) if is_first else (math.sqrt(c / dim_in) / w0)
    k_w, k_b = jax.random.split(key)
    w = jax.random.uniform(k_w, (dim_in, dim_out), jnp.float32, -w_std, w_std)
    b = jax.random.uniform(k_b, (1, dim_out), jnp.float32, -w_std, w_std)
    return w, b


def init_sirennet(key, dim_in, dim_hidden, dim_out, num_layers,
                  w0=1.0, w0_initial=30.0, c=6.0):
    """Returns list of (W, b, layer_w0, apply_sine) with W:(in,out), b:(1,out)."""
    keys = jax.random.split(key, num_layers + 1)
    layers = []
    for ind in range(num_layers):
        is_first = ind == 0
        layer_w0 = w0_initial if is_first else w0
        layer_dim_in = dim_in if is_first else dim_hidden
        w, b = _init_siren_linear(keys[ind], layer_dim_in, dim_hidden,
                                  layer_w0, c, is_first)
        layers.append((w, b, layer_w0, True))          # Sine(w0) activation
    # last layer: final_activation = nn.Identity()
    w, b = _init_siren_linear(keys[-1], dim_hidden, dim_out, w0, c, False)
    layers.append((w, b, w0, False))
    return layers


def init_siren_module(key, output_size, hidden_size1, hidden_size2, num_layers, w0):
    k1, k2 = jax.random.split(key)
    return {
        "net1": init_sirennet(k1, dim_in=768, dim_hidden=hidden_size2,
                              dim_out=hidden_size1, num_layers=num_layers,
                              w0=1.0, w0_initial=w0),
        "net2": init_sirennet(k2, dim_in=hidden_size1, dim_hidden=hidden_size2,
                              dim_out=output_size, num_layers=2,
                              w0=1.0, w0_initial=w0),
    }


def prepare_fused_layers(params):
    """One-time transform: fold w0 into sine layers, zero-pad features to 128 lanes.

    Valid because net1's output (T == 1) feeds net2 directly, so the whole stack is
    a single chain of affine+activation layers on (M, features) rows.
    """
    layers = list(params["net1"]) + list(params["net2"])
    fused = []
    for (w, b, w0, sine) in layers:
        if sine:
            # sin(w0*(xW + b)) == sin(x(w0*W) + (w0*b))
            w = w * w0
            b = b * w0
        din, dout = w.shape
        din_p, dout_p = _rup(din, 128), _rup(dout, 128)
        w_p = jnp.pad(w, ((0, din_p - din), (0, dout_p - dout)))
        b_p = jnp.pad(b, ((0, 0), (0, dout_p - dout)))
        fused.append((w_p, b_p, sine))
    return fused


# ------------------------------ forward passes ------------------------------ #
def siren_forward(params, fused_layers, x, output_size):
    """Fused Pallas forward.  x: (B, T, 768) -> (B, output_size)."""
    B, T, D = x.shape
    # The module's view(-1, T*hidden_size1) only matches net2's dim_in when T == 1,
    # exactly as in the PyTorch definition.
    assert T == 1, "Siren.forward requires T == 1 (as in the PyTorch module)"
    out = _fused_call(fused_layers, x.reshape(B * T, D))
    return out[:B, :output_size]


def _sirennet_reference(layers, x):
    for (w, b, w0, sine) in layers:
        y = x @ w + b
        x = jnp.sin(w0 * y) if sine else y
    return x


def siren_reference(params, x):
    """Pure-JAX reference with the original (unfused, unpadded) parameters."""
    B, T, D = x.shape
    h = _sirennet_reference(params["net1"], x.reshape(B * T, D))
    h = h.reshape(B, T, -1)
    h = h.reshape(-1, h.shape[1] * h.shape[2])
    return _sirennet_reference(params["net2"], h)


# ---------------------------------- main ------------------------------------ #
if __name__ == "__main__":
    output_size = 16
    hidden_size1 = 32
    hidden_size2 = 64
    num_layers = 3
    w0 = 30.0

    key = jax.random.PRNGKey(0)
    k_params, k_x = jax.random.split(key)

    params = init_siren_module(k_params, output_size, hidden_size1,
                               hidden_size2, num_layers, w0)
    fused_layers = prepare_fused_layers(params)

    # T must be 1 for the module's view(-1, T*hidden_size1) to match net2's dim_in.
    x = jax.random.normal(k_x, (2, 1, 768), dtype=jnp.float32)

    out = siren_forward(params, fused_layers, x, output_size)
    out = jax.block_until_ready(out)
    assert out.shape == (2, output_size), out.shape

    ref = jax.block_until_ready(siren_reference(params, x))
    assert jnp.allclose(out, ref, atol=1e-2, rtol=1e-2), (
        float(jnp.max(jnp.abs(out - ref))))

    print("KERNEL_OK")
</pallas_src>

<mosaic_0001>
module attributes {stable_mosaic.version = 11 : i64} {
  func.func @_fused_siren_kernel(%arg0: i32, %arg1: memref<8x768xf32, #tpu.memory_space<vmem>>, %arg2: memref<768x128xf32, #tpu.memory_space<vmem>>, %arg3: memref<1x128xf32, #tpu.memory_space<vmem>>, %arg4: memref<128x128xf32, #tpu.memory_space<vmem>>, %arg5: memref<1x128xf32, #tpu.memory_space<vmem>>, %arg6: memref<128x128xf32, #tpu.memory_space<vmem>>, %arg7: memref<1x128xf32, #tpu.memory_space<vmem>>, %arg8: memref<128x128xf32, #tpu.memory_space<vmem>>, %arg9: memref<1x128xf32, #tpu.memory_space<vmem>>, %arg10: memref<128x128xf32, #tpu.memory_space<vmem>>, %arg11: memref<1x128xf32, #tpu.memory_space<vmem>>, %arg12: memref<128x128xf32, #tpu.memory_space<vmem>>, %arg13: memref<1x128xf32, #tpu.memory_space<vmem>>, %arg14: memref<128x128xf32, #tpu.memory_space<vmem>>, %arg15: memref<1x128xf32, #tpu.memory_space<vmem>>, %arg16: memref<8x128xf32, #tpu.memory_space<vmem>>) attributes {dimension_semantics = [#tpu.dimension_semantics<parallel>], iteration_bounds = array<i64: 1>, scalar_prefetch = 0 : i64, scratch_operands = 0 : i64, tpu.core_type = #tpu.core_type<tc>, window_params = [{transform_indices = @transform_0, window_bounds = array<i64: 8, 768>}, {pipeline_mode = #tpu.pipeline_mode<synchronous>, transform_indices = @transform_1, window_bounds = array<i64: 768, 128>}, {pipeline_mode = #tpu.pipeline_mode<synchronous>, transform_indices = @transform_2, window_bounds = array<i64: 1, 128>}, {pipeline_mode = #tpu.pipeline_mode<synchronous>, transform_indices = @transform_3, window_bounds = array<i64: 128, 128>}, {pipeline_mode = #tpu.pipeline_mode<synchronous>, transform_indices = @transform_4, window_bounds = array<i64: 1, 128>}, {pipeline_mode = #tpu.pipeline_mode<synchronous>, transform_indices = @transform_5, window_bounds = array<i64: 128, 128>}, {pipeline_mode = #tpu.pipeline_mode<synchronous>, transform_indices = @transform_6, window_bounds = array<i64: 1, 128>}, {pipeline_mode = #tpu.pipeline_mode<synchronous>, transform_indices = @transform_7, window_bounds = array<i64: 128, 128>}, {pipeline_mode = #tpu.pipeline_mode<synchronous>, transform_indices = @transform_8, window_bounds = array<i64: 1, 128>}, {pipeline_mode = #tpu.pipeline_mode<synchronous>, transform_indices = @transform_9, window_bounds = array<i64: 128, 128>}, {pipeline_mode = #tpu.pipeline_mode<synchronous>, transform_indices = @transform_10, window_bounds = array<i64: 1, 128>}, {pipeline_mode = #tpu.pipeline_mode<synchronous>, transform_indices = @transform_11, window_bounds = array<i64: 128, 128>}, {pipeline_mode = #tpu.pipeline_mode<synchronous>, transform_indices = @transform_12, window_bounds = array<i64: 1, 128>}, {pipeline_mode = #tpu.pipeline_mode<synchronous>, transform_indices = @transform_13, window_bounds = array<i64: 128, 128>}, {pipeline_mode = #tpu.pipeline_mode<synchronous>, transform_indices = @transform_14, window_bounds = array<i64: 1, 128>}, {transform_indices = @transform_15, window_bounds = array<i64: 8, 128>}]} {
    %c0 = arith.constant 0 : index
    %c0_0 = arith.constant 0 : index
    %0 = vector.load %arg1[%c0, %c0_0] : memref<8x768xf32, #tpu.memory_space<vmem>>, vector<8x768xf32>
    %c0_1 = arith.constant 0 : index
    %c0_2 = arith.constant 0 : index
    %1 = vector.load %arg2[%c0_1, %c0_2] : memref<768x128xf32, #tpu.memory_space<vmem>>, vector<768x128xf32>
    %c0_3 = arith.constant 0 : index
    %c0_4 = arith.constant 0 : index
    %2 = vector.load %arg3[%c0_3, %c0_4] : memref<1x128xf32, #tpu.memory_space<vmem>>, vector<1x128xf32>
    %cst = arith.constant dense<0.000000e+00> : vector<8x128xf32>
    %3 = tpu.matmul %0, %1, %cst {dimension_numbers = #tpu.dot_dimension_numbers<[1], [0], [0], [1], [0, 0, 1, 1], [], []>} : vector<8x768xf32>, vector<768x128xf32>, vector<8x128xf32> -> vector<8x128xf32>
    %4 = vector.broadcast %2 : vector<1x128xf32> to vector<8x128xf32>
    %5 = arith.addf %3, %4 : vector<8x128xf32>
    %6 = math.sin %5 : vector<8x128xf32>
    %c0_5 = arith.constant 0 : index
    %c0_6 = arith.constant 0 : index
    %7 = vector.load %arg4[%c0_5, %c0_6] : memref<128x128xf32, #tpu.memory_space<vmem>>, vector<128x128xf32>
    %c0_7 = arith.constant 0 : index
    %c0_8 = arith.constant 0 : index
    %8 = vector.load %arg5[%c0_7, %c0_8] : memref<1x128xf32, #tpu.memory_space<vmem>>, vector<1x128xf32>
    %cst_9 = arith.constant dense<0.000000e+00> : vector<8x128xf32>
    %9 = tpu.matmul %6, %7, %cst_9 {dimension_numbers = #tpu.dot_dimension_numbers<[1], [0], [0], [1], [0, 0, 1, 1], [], []>} : vector<8x128xf32>, vector<128x128xf32>, vector<8x128xf32> -> vector<8x128xf32>
    %10 = vector.broadcast %8 : vector<1x128xf32> to vector<8x128xf32>
    %11 = arith.addf %9, %10 : vector<8x128xf32>
    %12 = math.sin %11 : vector<8x128xf32>
    %c0_10 = arith.constant 0 : index
    %c0_11 = arith.constant 0 : index
    %13 = vector.load %arg6[%c0_10, %c0_11] : memref<128x128xf32, #tpu.memory_space<vmem>>, vector<128x128xf32>
    %c0_12 = arith.constant 0 : index
    %c0_13 = arith.constant 0 : index
    %14 = vector.load %arg7[%c0_12, %c0_13] : memref<1x128xf32, #tpu.memory_space<vmem>>, vector<1x128xf32>
    %cst_14 = arith.constant dense<0.000000e+00> : vector<8x128xf32>
    %15 = tpu.matmul %12, %13, %cst_14 {dimension_numbers = #tpu.dot_dimension_numbers<[1], [0], [0], [1], [0, 0, 1, 1], [], []>} : vector<8x128xf32>, vector<128x128xf32>, vector<8x128xf32> -> vector<8x128xf32>
    %16 = vector.broadcast %14 : vector<1x128xf32> to vector<8x128xf32>
    %17 = arith.addf %15, %16 : vector<8x128xf32>
    %18 = math.sin %17 : vector<8x128xf32>
    %c0_15 = arith.constant 0 : index
    %c0_16 = arith.constant 0 : index
    %19 = vector.load %arg8[%c0_15, %c0_16] : memref<128x128xf32, #tpu.memory_space<vmem>>, vector<128x128xf32>
    %c0_17 = arith.constant 0 : index
    %c0_18 = arith.constant 0 : index
    %20 = vector.load %arg9[%c0_17, %c0_18] : memref<1x128xf32, #tpu.memory_space<vmem>>, vector<1x128xf32>
    %cst_19 = arith.constant dense<0.000000e+00> : vector<8x128xf32>
    %21 = tpu.matmul %18, %19, %cst_19 {dimension_numbers = #tpu.dot_dimension_numbers<[1], [0], [0], [1], [0, 0, 1, 1], [], []>} : vector<8x128xf32>, vector<128x128xf32>, vector<8x128xf32> -> vector<8x128xf32>
    %22 = vector.broadcast %20 : vector<1x128xf32> to vector<8x128xf32>
    %23 = arith.addf %21, %22 : vector<8x128xf32>
    %c0_20 = arith.constant 0 : index
    %c0_21 = arith.constant 0 : index
    %24 = vector.load %arg10[%c0_20, %c0_21] : memref<128x128xf32, #tpu.memory_space<vmem>>, vector<128x128xf32>
    %c0_22 = arith.constant 0 : index
    %c0_23 = arith.constant 0 : index
    %25 = vector.load %arg11[%c0_22, %c0_23] : memref<1x128xf32, #tpu.memory_space<vmem>>, vector<1x128xf32>
    %cst_24 = arith.constant dense<0.000000e+00> : vector<8x128xf32>
    %26 = tpu.matmul %23, %24, %cst_24 {dimension_numbers = #tpu.dot_dimension_numbers<[1], [0], [0], [1], [0, 0, 1, 1], [], []>} : vector<8x128xf32>, vector<128x128xf32>, vector<8x128xf32> -> vector<8x128xf32>
    %27 = vector.broadcast %25 : vector<1x128xf32> to vector<8x128xf32>
    %28 = arith.addf %26, %27 : vector<8x128xf32>
    %29 = math.sin %28 : vector<8x128xf32>
    %c0_25 = arith.constant 0 : index
    %c0_26 = arith.constant 0 : index
    %30 = vector.load %arg12[%c0_25, %c0_26] : memref<128x128xf32, #tpu.memory_space<vmem>>, vector<128x128xf32>
    %c0_27 = arith.constant 0 : index
    %c0_28 = arith.constant 0 : index
    %31 = vector.load %arg13[%c0_27, %c0_28] : memref<1x128xf32, #tpu.memory_space<vmem>>, vector<1x128xf32>
    %cst_29 = arith.constant dense<0.000000e+00> : vector<8x128xf32>
    %32 = tpu.matmul %29, %30, %cst_29 {dimension_numbers = #tpu.dot_dimension_numbers<[1], [0], [0], [1], [0, 0, 1, 1], [], []>} : vector<8x128xf32>, vector<128x128xf32>, vector<8x128xf32> -> vector<8x128xf32>
    %33 = vector.broadcast %31 : vector<1x128xf32> to vector<8x128xf32>
    %34 = arith.addf %32, %33 : vector<8x128xf32>
    %35 = math.sin %34 : vector<8x128xf32>
    %c0_30 = arith.constant 0 : index
    %c0_31 = arith.constant 0 : index
    %36 = vector.load %arg14[%c0_30, %c0_31] : memref<128x128xf32, #tpu.memory_space<vmem>>, vector<128x128xf32>
    %c0_32 = arith.constant 0 : index
    %c0_33 = arith.constant 0 : index
    %37 = vector.load %arg15[%c0_32, %c0_33] : memref<1x128xf32, #tpu.memory_space<vmem>>, vector<1x128xf32>
    %cst_34 = arith.constant dense<0.000000e+00> : vector<8x128xf32>
    %38 = tpu.matmul %35, %36, %cst_34 {dimension_numbers = #tpu.dot_dimension_numbers<[1], [0], [0], [1], [0, 0, 1, 1], [], []>} : vector<8x128xf32>, vector<128x128xf32>, vector<8x128xf32> -> vector<8x128xf32>
    %39 = vector.broadcast %37 : vector<1x128xf32> to vector<8x128xf32>
    %40 = arith.addf %38, %39 : vector<8x128xf32>
    %c0_35 = arith.constant 0 : index
    %c0_36 = arith.constant 0 : index
    %41 = vector.load %arg16[%c0_35, %c0_36] : memref<8x128xf32, #tpu.memory_space<vmem>>, vector<8x128xf32>
    tpu.vector_store %arg16[%c0_35, %c0_36], %40 {strides = array<i32>} : memref<8x128xf32, #tpu.memory_space<vmem>>, vector<8x128xf32>,
    return
  }
  func.func @transform_0(%arg0: i32) -> (i32, i32) {
    %c0_i32 = arith.constant 0 : i32
    %c0_i32_0 = arith.constant 0 : i32
    return %arg0, %c0_i32 : i32, i32
  }
  func.func @transform_1(%arg0: i32) -> (i32, i32) {
    %c0_i32 = arith.constant 0 : i32
    %c0_i32_0 = arith.constant 0 : i32
    %c0_i32_1 = arith.constant 0 : i32
    return %c0_i32, %c0_i32_0 : i32, i32
  }
  func.func @transform_2(%arg0: i32) -> (i32, i32) {
    %c0_i32 = arith.constant 0 : i32
    %c0_i32_0 = arith.constant 0 : i32
    %c0_i32_1 = arith.constant 0 : i32
    return %c0_i32, %c0_i32_0 : i32, i32
  }
  func.func @transform_3(%arg0: i32) -> (i32, i32) {
    %c0_i32 = arith.constant 0 : i32
    %c0_i32_0 = arith.constant 0 : i32
    %c0_i32_1 = arith.constant 0 : i32
    return %c0_i32, %c0_i32_0 : i32, i32
  }
  func.func @transform_4(%arg0: i32) -> (i32, i32) {
    %c0_i32 = arith.constant 0 : i32
    %c0_i32_0 = arith.constant 0 : i32
    %c0_i32_1 = arith.constant 0 : i32
    return %c0_i32, %c0_i32_0 : i32, i32
  }
  func.func @transform_5(%arg0: i32) -> (i32, i32) {
    %c0_i32 = arith.constant 0 : i32
    %c0_i32_0 = arith.constant 0 : i32
    %c0_i32_1 = arith.constant 0 : i32
    return %c0_i32, %c0_i32_0 : i32, i32
  }
  func.func @transform_6(%arg0: i32) -> (i32, i32) {
    %c0_i32 = arith.constant 0 : i32
    %c0_i32_0 = arith.constant 0 : i32
    %c0_i32_1 = arith.constant 0 : i32
    return %c0_i32, %c0_i32_0 : i32, i32
  }
  func.func @transform_7(%arg0: i32) -> (i32, i32) {
    %c0_i32 = arith.constant 0 : i32
    %c0_i32_0 = arith.constant 0 : i32
    %c0_i32_1 = arith.constant 0 : i32
    return %c0_i32, %c0_i32_0 : i32, i32
  }
  func.func @transform_8(%arg0: i32) -> (i32, i32) {
    %c0_i32 = arith.constant 0 : i32
    %c0_i32_0 = arith.constant 0 : i32
    %c0_i32_1 = arith.constant 0 : i32
    return %c0_i32, %c0_i32_0 : i32, i32
  }
  func.func @transform_9(%arg0: i32) -> (i32, i32) {
    %c0_i32 = arith.constant 0 : i32
    %c0_i32_0 = arith.constant 0 : i32
    %c0_i32_1 = arith.constant 0 : i32
    return %c0_i32, %c0_i32_0 : i32, i32
  }
  func.func @transform_10(%arg0: i32) -> (i32, i32) {
    %c0_i32 = arith.constant 0 : i32
    %c0_i32_0 = arith.constant 0 : i32
    %c0_i32_1 = arith.constant 0 : i32
    return %c0_i32, %c0_i32_0 : i32, i32
  }
  func.func @transform_11(%arg0: i32) -> (i32, i32) {
    %c0_i32 = arith.constant 0 : i32
    %c0_i32_0 = arith.constant 0 : i32
    %c0_i32_1 = arith.constant 0 : i32
    return %c0_i32, %c0_i32_0 : i32, i32
  }
  func.func @transform_12(%arg0: i32) -> (i32, i32) {
    %c0_i32 = arith.constant 0 : i32
    %c0_i32_0 = arith.constant 0 : i32
    %c0_i32_1 = arith.constant 0 : i32
    return %c0_i32, %c0_i32_0 : i32, i32
  }
  func.func @transform_13(%arg0: i32) -> (i32, i32) {
    %c0_i32 = arith.constant 0 : i32
    %c0_i32_0 = arith.constant 0 : i32
    %c0_i32_1 = arith.constant 0 : i32
    return %c0_i32, %c0_i32_0 : i32, i32
  }
  func.func @transform_14(%arg0: i32) -> (i32, i32) {
    %c0_i32 = arith.constant 0 : i32
    %c0_i32_0 = arith.constant 0 : i32
    %c0_i32_1 = arith.constant 0 : i32
    return %c0_i32, %c0_i32_0 : i32, i32
  }
  func.func @transform_15(%arg0: i32) -> (i32, i32) {
    %c0_i32 = arith.constant 0 : i32
    %c0_i32_0 = arith.constant 0 : i32
    return %arg0, %c0_i32 : i32, i32
  }
}

</mosaic_0001>

<bundles_post_ra>
// kernel: tpu_custom_call.1
= control target key start
LH: loop header
LB: loop body
LE: loop exit
PB: predicated region body
PF: predicated region fallthrough
CT: control target
= control target key end

     0   :  { %20 = vsyncpa [#allocation3], 0  ;;  %s2706_s0 = inlined_call_operand.hbm [shape: f32[8,768], index: 0, kind: input, shape index: {}]   ;;  %s2707_s1 = inlined_call_operand.hbm [shape: f32[768,128], index: 1, kind: input, shape index: {}]   ;;  %s2708_s2 = inlined_call_operand.vmem [shape: f32[1,128], index: 2, kind: input, shape index: {}]   ;;  %s2709_s3 = inlined_call_operand.hbm [shape: f32[128,128], index: 3, kind: input, shape index: {}]   ;;  %s2710_s4 = inlined_call_operand.vmem [shape: f32[1,128], index: 4, kind: input, shape index: {}]   ;;  %s2711_s5 = inlined_call_operand.hbm [shape: f32[128,128], index: 5, kind: input, shape index: {}]   ;;  %s2712_s6 = inlined_call_operand.vmem [shape: f32[1,128], index: 6, kind: input, shape index: {}]   ;;  %s2713_s7 = inlined_call_operand.hbm [shape: f32[128,128], index: 7, kind: input, shape index: {}]   ;;  %s2714_s8 = inlined_call_operand.vmem [shape: f32[1,128], index: 8, kind: input, shape index: {}]   ;;  %s2715_s9 = inlined_call_operand.hbm [shape: f32[128,128], index: 9, kind: input, shape index: {}]   ;;  %s2716_s10 = inlined_call_operand.vmem [shape: f32[1,128], index: 10, kind: input, shape index: {}]   ;;  %s2717_s11 = inlined_call_operand.hbm [shape: f32[128,128], index: 11, kind: input, shape index: {}]   ;;  %s2718_s12 = inlined_call_operand.vmem [shape: f32[1,128], index: 12, kind: input, shape index: {}]   ;;  %s2719_s13 = inlined_call_operand.hbm [shape: f32[128,128], index: 13, kind: input, shape index: {}]   ;;  %s2720_s14 = inlined_call_operand.vmem [shape: f32[1,128], index: 14, kind: input, shape index: {}]   ;;  %s2721_s15 = inlined_call_operand.hbm [shape: f32[8,128], index: 15, kind: output, shape index: {}]  }
   0x1   :  { %21 = vsyncpa [#allocation6], 0 }
   0x2   :  { %22 = vsyncpa [#allocation9], 0 }
   0x3   :  { %23 = vsyncpa [#allocation12], 0 }
   0x4   :  { %24 = vsyncpa [#allocation15], 0 }
   0x5   :  { %25 = vsyncpa [#allocation4], 0  ;;  %s2270_s18 = smov [#allocation5]  }
   0x6   :  { %s41_s19 = sshll.u32 %s2270_s18, 4  ;;  %s42_s19 = int_to_ptr.vmem [resolvable:$true] %s41_s19 }
   0x7   :  { %s2086_s20 = scalar_lea.vmem %s42_s19, 12288  ;;  %p2091_p1 = scmp.lt.s32.totalorder %s42_s19, %s42_s19 }
   0x8   :  { %p2087_p0 = scmp.ne.s32.totalorder %s42_s19, %s2086_s20  ;;  %p2092_p2 = scmp.lt.s32.totalorder %s2086_s20, %s2086_s20 }
   0xa   :  { %p2093_p3 = por %p2092_p2, %p2091_p1 }
   0xc   :  { %p2094_p4 = pnand %p2093_p3, %p2087_p0 }
   0xe   :  { %2097 = shalt.err (!%p2094_p4)
}
   0xf   :  { %s2271_s21 = smov 128   ;;  %s2272_s22 = smov 8  }
  0x10   :  { %47 = dma.hbm_to_vmem [thread:$0]  %s2707_s1, 12288, %s42_s19, [#allocation6], %s2271_s21, %s2271_s21, %s2272_s22  }
  0x11   :  { %s2273_s25 = smov [#allocation8]   ;;  %s2274_s27 = smov [#allocation11]  }
  0x12   :  { %s69_s26 = sshll.u32 %s2273_s25, 4  ;;  %s97_s28 = sshll.u32 %s2274_s27, 4  ;;  %s70_s26 = int_to_ptr.vmem [resolvable:$true] %s69_s26  ;;  %s98_s28 = int_to_ptr.vmem [resolvable:$true] %s97_s28 }
  0x13   :  { %s2106_s29 = scalar_lea.vmem %s70_s26, 2048  ;;  %p2111_p6 = scmp.lt.s32.totalorder %s70_s26, %s70_s26 }
  0x14   :  { %p2107_p5 = scmp.ne.s32.totalorder %s70_s26, %s2106_s29  ;;  %p2112_p7 = scmp.lt.s32.totalorder %s2106_s29, %s2106_s29 }
  0x16   :  { %p2113_p8 = por %p2112_p7, %p2111_p6 }
  0x18   :  { %p2114_p9 = pnand %p2113_p8, %p2107_p5 }
  0x1a   :  { %2117 = shalt.err (!%p2114_p9)
}
  0x1b   :  { %75 = dma.hbm_to_vmem [thread:$0]  %s2711_s5, 2048, %s70_s26, [#allocation9], %s2271_s21, %s2271_s21, %s2272_s22  }
  0x1c   :  { %s2126_s1 = scalar_lea.vmem %s98_s28, 2048  ;;  %p2131_p11 = scmp.lt.s32.totalorder %s98_s28, %s98_s28 }
  0x1d   :  { %p2127_p10 = scmp.ne.s32.totalorder %s98_s28, %s2126_s1  ;;  %p2132_p12 = scmp.lt.s32.totalorder %s2126_s1, %s2126_s1 }
  0x1f   :  { %p2133_p13 = por %p2132_p12, %p2131_p11 }
  0x21   :  { %p2134_p0 = pnand %p2133_p13, %p2127_p10 }
  0x23   :  { %2137 = shalt.err (!%p2134_p0)
}
  0x24   :  { %103 = dma.hbm_to_vmem [thread:$0]  %s2715_s9, 2048, %s98_s28, [#allocation12], %s2271_s21, %s2271_s21, %s2272_s22  }
  0x25   :  { %s2275_s19 = smov [#allocation2]   ;;  %s2276_s23 = smov [#allocation7]  }
  0x26   :  { %s32_s20 = sshll.u32 %s2275_s19, 4  ;;  %s55_s5 = sshll.u32 %s2276_s23, 4  ;;  %s33_s20 = int_to_ptr.vmem [resolvable:$true] %s32_s20  ;;  %s56_s5 = int_to_ptr.vmem [resolvable:$true] %s55_s5 }
  0x27   :  { %s2146_s24 = scalar_lea.vmem %s33_s20, 768  ;;  %p2151_p2 = scmp.lt.s32.totalorder %s33_s20, %s33_s20 }
  0x28   :  { %p2147_p1 = scmp.ne.s32.totalorder %s33_s20, %s2146_s24  ;;  %p2152_p3 = scmp.lt.s32.totalorder %s2146_s24, %s2146_s24 }
  0x2a   :  { %p2153_p4 = por %p2152_p3, %p2151_p2 }
  0x2c   :  { %p2154_p5 = pnand %p2153_p4, %p2147_p1 }
  0x2e   :  { %2157 = shalt.err (!%p2154_p5)
}
  0x2f   :  { %35 = dma.hbm_to_vmem [thread:$0]  %s2706_s0, 768, %s33_s20, [#allocation3]  }
  0x30   :  { %s2166_s27 = scalar_lea.vmem %s56_s5, 2048  ;;  %p2171_p7 = scmp.lt.s32.totalorder %s56_s5, %s56_s5 }
  0x31   :  { %p2167_p6 = scmp.ne.s32.totalorder %s56_s5, %s2166_s27  ;;  %p2172_p8 = scmp.lt.s32.totalorder %s2166_s27, %s2166_s27 }
  0x33   :  { %p2173_p9 = por %p2172_p8, %p2171_p7 }
  0x35   :  { %p2174_p10 = pnand %p2173_p9, %p2167_p6 }
  0x37   :  { %2177 = shalt.err (!%p2174_p10)
}
  0x38   :  { %61 = dma.hbm_to_vmem [thread:$0]  %s2709_s3, 2048, %s56_s5, [#allocation6], %s2271_s21, %s2271_s21, %s2272_s22  }
  0x39   :  { %s2277_s29 = smov [#allocation10]   ;;  %s2278_s16 = smov [#allocation13]  }
  0x3a   :  { %s83_s30 = sshll.u32 %s2277_s29, 4  ;;  %s111_s0 = sshll.u32 %s2278_s16, 4  ;;  %s84_s30 = int_to_ptr.vmem [resolvable:$true] %s83_s30  ;;  %s112_s0 = int_to_ptr.vmem [resolvable:$true] %s111_s0 }
  0x3b   :  { %s2186_s1 = scalar_lea.vmem %s84_s30, 2048  ;;  %p2191_p12 = scmp.lt.s32.totalorder %s84_s30, %s84_s30 }
  0x3c   :  { %p2187_p11 = scmp.ne.s32.totalorder %s84_s30, %s2186_s1  ;;  %p2192_p13 = scmp.lt.s32.totalorder %s2186_s1, %s2186_s1 }
  0x3e   :  { %p2193_p0 = por %p2192_p13, %p2191_p12 }
  0x40   :  { %p2194_p1 = pnand %p2193_p0, %p2187_p11 }
  0x42   :  { %2197 = shalt.err (!%p2194_p1)
}
  0x43   :  { %89 = dma.hbm_to_vmem [thread:$0]  %s2713_s7, 2048, %s84_s30, [#allocation9], %s2271_s21, %s2271_s21, %s2272_s22  }
  0x44   :  { %s2206_s3 = scalar_lea.vmem %s112_s0, 2048  ;;  %p2211_p3 = scmp.lt.s32.totalorder %s112_s0, %s112_s0 }
  0x45   :  { %p2207_p2 = scmp.ne.s32.totalorder %s112_s0, %s2206_s3  ;;  %p2212_p4 = scmp.lt.s32.totalorder %s2206_s3, %s2206_s3 }
  0x47   :  { %p2213_p5 = por %p2212_p4, %p2211_p3 }
  0x49   :  { %p2214_p6 = pnand %p2213_p5, %p2207_p2 }
  0x4b   :  { %2217 = shalt.err (!%p2214_p6)
}
  0x4c   :  { %117 = dma.hbm_to_vmem [thread:$0]  %s2717_s11, 2048, %s112_s0, [#allocation12], %s2271_s21, %s2271_s21, %s2272_s22  }
  0x4d   :  { %s2279_s23 = smov [#allocation14]  }
  0x4e   :  { %s125_s5 = sshll.u32 %s2279_s23, 4  ;;  %s126_s5 = int_to_ptr.vmem [resolvable:$true] %s125_s5 }
  0x4f   :  { %s2226_s24 = scalar_lea.vmem %s126_s5, 2048  ;;  %p2231_p8 = scmp.lt.s32.totalorder %s126_s5, %s126_s5 }
  0x50   :  { %p2227_p7 = scmp.ne.s32.totalorder %s126_s5, %s2226_s24  ;;  %p2232_p9 = scmp.lt.s32.totalorder %s2226_s24, %s2226_s24 }
  0x52   :  { %p2233_p10 = por %p2232_p9, %p2231_p8 }
  0x54   :  { %p2234_p11 = pnand %p2233_p10, %p2227_p7 }
  0x56   :  { %2237 = shalt.err (!%p2234_p11)
}
  0x57   :  { %131 = dma.hbm_to_vmem [thread:$0]  %s2719_s13, 2048, %s126_s5, [#allocation15], %s2271_s21, %s2271_s21, %s2272_s22  }
  0x58   :  { %2258 = dma.done.wait [#allocation3], 768  }
  0x59   :  { %2259 = vsyncadd [#allocation3], 4294966528 }
  0x5a   :  { %2260 = dma.done.wait [#allocation6], 14336  }
  0x5b   :  { %2261 = vsyncadd [#allocation6], 4294952960 }
  0x5c   :  { %2262 = dma.done.wait [#allocation9], 4096  }
  0x5d   :  { %2263 = vsyncadd [#allocation9], 4294963200 }
  0x5e   :  { %2264 = dma.done.wait [#allocation12], 4096  }
  0x5f   :  { %2265 = vsyncadd [#allocation12], 4294963200 }
  0x60   :  { %2266 = dma.done.wait [#allocation15], 2048  }
  0x61   :  { %2267 = vsyncadd [#allocation15], 4294965248  ;;  %v195_v0 = vld [vmem:[#allocation5 + $0xf8] sm:$0xff]  ;;  %v194_v2 = vld [vmem:[#allocation5 + $0xf0] sm:$0xff]  ;;  %vm2281_vm0 = vmmov 0   ;;  %s2288_s29 = smov [#allocation16]  }
  0x62   :  { %v179_v1 = vld [vmem:[#allocation5 + $0x78] sm:$0xff]  ;;  %1602 = vmatprep.subr.mxu0 %v195_v0  ;;  %v178_v4 = vld [vmem:[#allocation5 + $0x70] sm:$0xff]  ;;  %v193_v6 = vld [vmem:[#allocation5 + $0xe8] sm:$0xff]  ;;  %s1562_s30 = sshll.u32 %s2288_s29, 4  ;;  %s1563_s30 = int_to_ptr.vmem [resolvable:$true] %s1562_s30 }
  0x63   :  { %v227_v3 = vld [vmem:[#allocation5 + $0x1f8] sm:$0xff]  ;;  %1603 = vmatpush3.msra.mxu0 %v179_v1  ;;  %v226_v7 = vld [vmem:[#allocation5 + $0x1f0] sm:$0xff]  ;;  %v177_v8 = vld [vmem:[#allocation5 + $0x68] sm:$0xff]  ;;  %s2238_s16 = scalar_lea.vmem %s1563_s30, 128  ;;  %p2243_p13 = scmp.lt.s32.totalorder %s1563_s30, %s1563_s30 }
  0x64   :  { %v211_v5 = vld [vmem:[#allocation5 + $0x178] sm:$0xff]  ;;  %1637 = vmatprep.subr.mxu1 %v227_v3  ;;  %1604 = vmatprep.subr.mxu0 %v194_v2  ;;  %v210_v9 = vld [vmem:[#allocation5 + $0x170] sm:$0xff]  ;;  %v225_v10 = vld [vmem:[#allocation5 + $0x1e8] sm:$0xff]  ;;  %p2239_p12 = scmp.ne.s32.totalorder %s1563_s30, %s2238_s16  ;;  %p2244_p0 = scmp.lt.s32.totalorder %s2238_s16, %s2238_s16 }
  0x65   :  { %1638 = vmatpush3.msra.mxu1 %v211_v5  ;;  %1605 = vmatpush3.msra.mxu0 %v178_v4  ;;  %v192_v11 = vld [vmem:[#allocation5 + $0xe0] sm:$0xff]  ;;  %v209_v12 = vld [vmem:[#allocation5 + $0x168] sm:$0xff]  ;;  %v191_v15 = vld [vmem:[#allocation5 + $0xd8] sm:$0xff] }
  0x66   :  { %1639 = vmatprep.subr.mxu1 %v226_v7  ;;  %1606 = vmatprep.subr.mxu0 %v193_v6  ;;  %v176_v13 = vld [vmem:[#allocation5 + $0x60] sm:$0xff]  ;;  %v175_v17 = vld [vmem:[#allocation5 + $0x58] sm:$0xff]  ;;  %v190_v19 = vld [vmem:[#allocation5 + $0xd0] sm:$0xff]  ;;  %p2245_p1 = por %p2244_p0, %p2243_p13 }
  0x67   :  { %1640 = vmatpush3.msra.mxu1 %v210_v9  ;;  %v224_v14 = vld [vmem:[#allocation5 + $0x1e0] sm:$0xff]  ;;  %1607 = vmatpush3.msra.mxu0 %v177_v8  ;;  %v223_v18 = vld [vmem:[#allocation5 + $0x1d8] sm:$0xff]  ;;  %v174_v21 = vld [vmem:[#allocation5 + $0x50] sm:$0xff] }
  0x68   :  { %1641 = vmatprep.subr.mxu1 %v225_v10  ;;  %v208_v16 = vld [vmem:[#allocation5 + $0x160] sm:$0xff]  ;;  %1608 = vmatprep.subr.mxu0 %v192_v11  ;;  %v207_v20 = vld [vmem:[#allocation5 + $0x158] sm:$0xff]  ;;  %v222_v22 = vld [vmem:[#allocation5 + $0x1d0] sm:$0xff]  ;;  %p2246_p2 = pnand %p2245_p1, %p2239_p12 }
  0x69   :  { %1642 = vmatpush3.msra.mxu1 %v209_v12  ;;  %1609 = vmatpush3.msra.mxu0 %v176_v13  ;;  %v189_v23 = vld [vmem:[#allocation5 + $0xc8] sm:$0xff]  ;;  %v206_v24 = vld [vmem:[#allocation5 + $0x150] sm:$0xff]  ;;  %v188_v27 = vld [vmem:[#allocation5 + $0xc0] sm:$0xff] }
  0x6a   :  { %1643 = vmatprep.subr.mxu1 %v224_v14  ;;  %1610 = vmatprep.subr.mxu0 %v191_v15  ;;  %v173_v25 = vld [vmem:[#allocation5 + $0x48] sm:$0xff]  ;;  %v172_v29 = vld [vmem:[#allocation5 + $0x40] sm:$0xff]  ;;  %v187_v31 = vld [vmem:[#allocation5 + $0xb8] sm:$0xff] }
  0x6b   :  { %1644 = vmatpush3.msra.mxu1 %v208_v16  ;;  %1611 = vmatpush3.msra.mxu0 %v175_v17  ;;  %v221_v26 = vld [vmem:[#allocation5 + $0x1c8] sm:$0xff]  ;;  %v220_v30 = vld [vmem:[#allocation5 + $0x1c0] sm:$0xff]  ;;  %v171_v33 = vld [vmem:[#allocation5 + $0x38] sm:$0xff] }
  0x6c   :  { %1645 = vmatprep.subr.mxu1 %v223_v18  ;;  %1612 = vmatprep.subr.mxu0 %v190_v19  ;;  %v205_v28 = vld [vmem:[#allocation5 + $0x148] sm:$0xff]  ;;  %v204_v32 = vld [vmem:[#allocation5 + $0x140] sm:$0xff]  ;;  %v219_v34 = vld [vmem:[#allocation5 + $0x1b8] sm:$0xff] }
  0x6d   :  { %1646 = vmatpush3.msra.mxu1 %v207_v20  ;;  %1613 = vmatpush3.msra.mxu0 %v174_v21  ;;  %v186_v35 = vld [vmem:[#allocation5 + $0xb0] sm:$0xff]  ;;  %v203_v36 = vld [vmem:[#allocation5 + $0x138] sm:$0xff]  ;;  %v185_v39 = vld [vmem:[#allocation5 + $0xa8] sm:$0xff] }
  0x6e   :  { %1647 = vmatprep.subr.mxu1 %v222_v22  ;;  %1614 = vmatprep.subr.mxu0 %v189_v23  ;;  %v170_v37 = vld [vmem:[#allocation5 + $0x30] sm:$0xff]  ;;  %v169_v41 = vld [vmem:[#allocation5 + $0x28] sm:$0xff]  ;;  %v184_v43 = vld [vmem:[#allocation5 + $0xa0] sm:$0xff] }
  0x6f   :  { %1648 = vmatpush3.msra.mxu1 %v206_v24  ;;  %1615 = vmatpush3.msra.mxu0 %v173_v25  ;;  %v218_v38 = vld [vmem:[#allocation5 + $0x1b0] sm:$0xff]  ;;  %v217_v42 = vld [vmem:[#allocation5 + $0x1a8] sm:$0xff]  ;;  %v168_v45 = vld [vmem:[#allocation5 + $0x20] sm:$0xff] }
  0x70   :  { %1649 = vmatprep.subr.mxu1 %v221_v26  ;;  %1616 = vmatprep.subr.mxu0 %v188_v27  ;;  %v202_v40 = vld [vmem:[#allocation5 + $0x130] sm:$0xff]  ;;  %v201_v44 = vld [vmem:[#allocation5 + $0x128] sm:$0xff]  ;;  %v216_v46 = vld [vmem:[#allocation5 + $0x1a0] sm:$0xff] }
  0x71   :  { %1650 = vmatpush3.msra.mxu1 %v205_v28  ;;  %1617 = vmatpush3.msra.mxu0 %v172_v29  ;;  %v183_v47 = vld [vmem:[#allocation5 + $0x98] sm:$0xff]  ;;  %v200_v48 = vld [vmem:[#allocation5 + $0x120] sm:$0xff]  ;;  %v182_v51 = vld [vmem:[#allocation5 + $0x90] sm:$0xff] }
  0x72   :  { %1651 = vmatprep.subr.mxu1 %v220_v30  ;;  %1618 = vmatprep.subr.mxu0 %v187_v31  ;;  %v167_v49 = vld [vmem:[#allocation5 + $0x18] sm:$0xff]  ;;  %v166_v53 = vld [vmem:[#allocation5 + $0x10] sm:$0xff]  ;;  %v181_v55 = vld [vmem:[#allocation5 + $0x88] sm:$0xff] }
  0x73   :  { %1652 = vmatpush3.msra.mxu1 %v204_v32  ;;  %1619 = vmatpush3.msra.mxu0 %v171_v33  ;;  %v215_v50 = vld [vmem:[#allocation5 + $0x198] sm:$0xff]  ;;  %v214_v54 = vld [vmem:[#allocation5 + $0x190] sm:$0xff]  ;;  %v165_v57 = vld [vmem:[#allocation5 + $0x8] sm:$0xff] }
  0x74   :  { %1653 = vmatprep.subr.mxu1 %v219_v34  ;;  %1620 = vmatprep.subr.mxu0 %v186_v35  ;;  %v199_v52 = vld [vmem:[#allocation5 + $0x118] sm:$0xff]  ;;  %v198_v56 = vld [vmem:[#allocation5 + $0x110] sm:$0xff]  ;;  %v213_v58 = vld [vmem:[#allocation5 + $0x188] sm:$0xff] }
  0x75   :  { %1654 = vmatpush3.msra.mxu1 %v203_v36  ;;  %1621 = vmatpush3.msra.mxu0 %v170_v37  ;;  %v180_v59 = vld [vmem:[#allocation5 + $0x80] sm:$0xff]  ;;  %v159_v60 = vld [vmem:[#allocation2 + $0x8] sm:$0xff]  ;;  %v197_v62 = vld [vmem:[#allocation5 + $0x108] sm:$0xff] }
  0x76   :  { %1655 = vmatprep.subr.mxu1 %v218_v38  ;;  %1622 = vmatprep.subr.mxu0 %v185_v39  ;;  %v164_v61 = vld [vmem:[#allocation5] sm:$0xff]  ;;  %v158_v63 = vld [vmem:[#allocation2] sm:$0xff]  ;;  %v259_v1 = vld [vmem:[#allocation5 + $0x2f8] sm:$0xff]  ;;  %v2280_v39 = vmov 0.0  }
  0x77   :  { %1656 = vmatpush3.msra.mxu1 %v202_v40  ;;  %1623 = vmatpush3.msra.mxu0 %v169_v41  ;;  %v212_v0 = vld [vmem:[#allocation5 + $0x180] sm:$0xff]  ;;  %v161_v3 = vld [vmem:[#allocation2 + $0x18] sm:$0xff]  ;;  %v243_v4 = vld [vmem:[#allocation5 + $0x278] sm:$0xff] }
  0x78   :  { %1657 = vmatprep.subr.mxu1 %v217_v42  ;;  %1624 = vmatprep.subr.mxu0 %v184_v43  ;;  %v196_v2 = vld [vmem:[#allocation5 + $0x100] sm:$0xff]  ;;  %v258_v6 = vld [vmem:[#allocation5 + $0x2f0] sm:$0xff]  ;;  %v163_v8 = vld [vmem:[#allocation2 + $0x28] sm:$0xff] }
  0x79   :  { %1658 = vmatpush3.msra.mxu1 %v201_v44  ;;  %1625 = vmatpush3.msra.mxu0 %v168_v45  ;;  %v160_v5 = vld [vmem:[#allocation2 + $0x10] sm:$0xff]  ;;  %v242_v7 = vld [vmem:[#allocation5 + $0x270] sm:$0xff]  ;;  %v257_v9 = vld [vmem:[#allocation5 + $0x2e8] sm:$0xff] }
  0x7a   :  { %1659 = vmatprep.subr.mxu1 %v216_v46  ;;  %1626 = vmatprep.subr.mxu0 %v183_v47  ;;  %v241_v10 = vld [vmem:[#allocation5 + $0x268] sm:$0xff]  ;;  %v256_v11 = vld [vmem:[#allocation5 + $0x2e0] sm:$0xff]  ;;  %v255_v13 = vld [vmem:[#allocation5 + $0x2d8] sm:$0xff] }
  0x7b   :  { %1660 = vmatpush3.msra.mxu1 %v200_v48  ;;  %1627 = vmatpush3.msra.mxu0 %v167_v49  ;;  %v240_v12 = vld [vmem:[#allocation5 + $0x260] sm:$0xff]  ;;  %v239_v14 = vld [vmem:[#allocation5 + $0x258] sm:$0xff]  ;;  %v254_v15 = vld [vmem:[#allocation5 + $0x2d0] sm:$0xff] }
  0x7c   :  { %1661 = vmatprep.subr.mxu1 %v215_v50  ;;  %1628 = vmatprep.subr.mxu0 %v182_v51  ;;  %v238_v16 = vld [vmem:[#allocation5 + $0x250] sm:$0xff]  ;;  %v253_v17 = vld [vmem:[#allocation5 + $0x2c8] sm:$0xff]  ;;  %v252_v19 = vld [vmem:[#allocation5 + $0x2c0] sm:$0xff] }
  0x7d   :  { %1662 = vmatpush3.msra.mxu1 %v199_v52  ;;  %1629 = vmatpush3.msra.mxu0 %v166_v53  ;;  %v237_v18 = vld [vmem:[#allocation5 + $0x248] sm:$0xff]  ;;  %v236_v20 = vld [vmem:[#allocation5 + $0x240] sm:$0xff]  ;;  %v251_v21 = vld [vmem:[#allocation5 + $0x2b8] sm:$0xff] }
  0x7e   :  { %1663 = vmatprep.subr.mxu1 %v214_v54  ;;  %1630 = vmatprep.subr.mxu0 %v181_v55  ;;  %v235_v22 = vld [vmem:[#allocation5 + $0x238] sm:$0xff]  ;;  %v250_v23 = vld [vmem:[#allocation5 + $0x2b0] sm:$0xff]  ;;  %v249_v25 = vld [vmem:[#allocation5 + $0x2a8] sm:$0xff] }
  0x7f   :  { %1664 = vmatpush3.msra.mxu1 %v198_v56  ;;  %1631 = vmatpush3.msra.mxu0 %v165_v57  ;;  %v234_v24 = vld [vmem:[#allocation5 + $0x230] sm:$0xff]  ;;  %v233_v26 = vld [vmem:[#allocation5 + $0x228] sm:$0xff]  ;;  %v248_v27 = vld [vmem:[#allocation5 + $0x2a0] sm:$0xff] }
  0x80   :  { %1665 = vmatprep.subr.mxu1 %v213_v58  ;;  %1632 = vmatprep.subr.mxu0 %v180_v59  ;;  %v232_v28 = vld [vmem:[#allocation5 + $0x220] sm:$0xff]  ;;  %v247_v29 = vld [vmem:[#allocation5 + $0x298] sm:$0xff]  ;;  %v246_v31 = vld [vmem:[#allocation5 + $0x290] sm:$0xff] }
  0x81   :  { %331 = vmatprep.mubr.f32.mxu0 %v159_v60  ;;  %1633 = vmatpush3.msra.mxu0 %v164_v61  ;;  %v231_v30 = vld [vmem:[#allocation5 + $0x218] sm:$0xff]  ;;  %v230_v32 = vld [vmem:[#allocation5 + $0x210] sm:$0xff]  ;;  %v245_v33 = vld [vmem:[#allocation5 + $0x288] sm:$0xff] }
  0x82   :  { %1666 = vmatpush3.msra.mxu1 %v197_v62  ;;  %332 = vmatmul.mubr.f32.vlgmr.msra.gmra.mxu0 %v158_v63  ;;  %v229_v34 = vld [vmem:[#allocation5 + $0x208] sm:$0xff]  ;;  %v244_v35 = vld [vmem:[#allocation5 + $0x280] sm:$0xff]  ;;  %v162_v37 = vld [vmem:[#allocation2 + $0x20] sm:$0xff] }
  0x83   :  { %1667 = vmatprep.subr.mxu1 %v212_v0  ;;  %1672 = vmatprep.subr.mxu0 %v259_v1  ;;  %v228_v36 = vld [vmem:[#allocation5 + $0x200] sm:$0xff]  ;;  %v596_v38 = vld [vmem:[#allocation7 + $0x78] sm:$0xff]  ;;  %v595_v40 = vld [vmem:[#allocation7 + $0x70] sm:$0xff] }
  0x84   :  { %1668 = vmatpush3.msra.mxu1 %v196_v2  ;;  %401 = vmatprep.mubr.f32.mxu1 %v161_v3  ;;  %v594_v41 = vld [vmem:[#allocation7 + $0x68] sm:$0xff]  ;;  %v593_v42 = vld [vmem:[#allocation7 + $0x60] sm:$0xff]  ;;  %v592_v43 = vld [vmem:[#allocation7 + $0x58] sm:$0xff] }
  0x85   :  { %1673 = vmatpush3.msra.mxu0 %v243_v4  ;;  %402 = vmatmul.mubr.f32.vlgmr.msra.gmra.mxu1 %v160_v5  ;;  %v591_v44 = vld [vmem:[#allocation7 + $0x50] sm:$0xff]  ;;  %v590_v45 = vld [vmem:[#allocation7 + $0x48] sm:$0xff]  ;;  %v589_v46 = vld [vmem:[#allocation7 + $0x40] sm:$0xff] }
  0x86   :  { %1674 = vmatprep.subr.mxu0 %v258_v6  ;;  %471 = vmatprep.mubr.f32.mxu0 %v163_v8  ;;  %v588_v47 = vld [vmem:[#allocation7 + $0x38] sm:$0xff]  ;;  %v587_v48 = vld [vmem:[#allocation7 + $0x30] sm:$0xff]  ;;  %v586_v49 = vld [vmem:[#allocation7 + $0x28] sm:$0xff] }
  0x87   :  { %1675 = vmatpush3.msra.mxu0 %v242_v7  ;;  %1809 = vmatprep.subr.mxu1 %v2280_v39  ;;  %v585_v50 = vld [vmem:[#allocation7 + $0x20] sm:$0xff]  ;;  %v584_v51 = vld [vmem:[#allocation7 + $0x18] sm:$0xff]  ;;  %v583_v52 = vld [vmem:[#allocation7 + $0x10] sm:$0xff] }
  0x88   :  { %1676 = vmatprep.subr.mxu0 %v257_v9  ;;  %1841 = vmatprep.mubr.msk.f32.mxu1 %vm2281_vm0, %v2280_v39  ;;  %v582_v53 = vld [vmem:[#allocation7 + $0x8] sm:$0xff]  ;;  %v581_v54 = vld [vmem:[#allocation7] sm:$0xff]  ;;  %v1575_v59 = vld [vmem:[%s2708_s2] ss:$0 sm:$0xff] }
  0x89   :  { %1677 = vmatpush3.msra.mxu0 %v241_v10  ;;  %1810 = vmatpush3.msra.mxu1 %v596_v38 }
  0x8a   :  { %1678 = vmatprep.subr.mxu0 %v256_v11  ;;  %1811 = vmatprep.subr.mxu1 %v2280_v39 }
  0x8b   :  { %1679 = vmatpush3.msra.mxu0 %v240_v12  ;;  %1812 = vmatpush3.msra.mxu1 %v595_v40 }
  0x8c   :  { %1680 = vmatprep.subr.mxu0 %v255_v13  ;;  %1813 = vmatprep.subr.mxu1 %v2280_v39 }
  0x8d   :  { %1681 = vmatpush3.msra.mxu0 %v239_v14  ;;  %1814 = vmatpush3.msra.mxu1 %v594_v41 }
  0x8e   :  { %1682 = vmatprep.subr.mxu0 %v254_v15  ;;  %1815 = vmatprep.subr.mxu1 %v2280_v39  ;;  %v2282_v15 = vmov 2102212464  }
  0x8f   :  { %1683 = vmatpush3.msra.mxu0 %v238_v16  ;;  %1816 = vmatpush3.msra.mxu1 %v593_v42 }
  0x90   :  { %1684 = vmatprep.subr.mxu0 %v253_v17  ;;  %1817 = vmatprep.subr.mxu1 %v2280_v39  ;;  %v2283_v17 = vmov 920167782  }
  0x91   :  { %1685 = vmatpush3.msra.mxu0 %v237_v18  ;;  %1818 = vmatpush3.msra.mxu1 %v592_v43 }
  0x92   :  { %1686 = vmatprep.subr.mxu0 %v252_v19  ;;  %1819 = vmatprep.subr.mxu1 %v2280_v39 }
  0x93   :  { %1687 = vmatpush3.msra.mxu0 %v236_v20  ;;  %1820 = vmatpush3.msra.mxu1 %v591_v44 }
  0x94   :  { %1688 = vmatprep.subr.mxu0 %v251_v21  ;;  %1821 = vmatprep.subr.mxu1 %v2280_v39  ;;  %v2284_v21 = vmov 1326507024  }
  0x95   :  { %1689 = vmatpush3.msra.mxu0 %v235_v22  ;;  %1822 = vmatpush3.msra.mxu1 %v590_v45 }
  0x96   :  { %1690 = vmatprep.subr.mxu0 %v250_v23  ;;  %1823 = vmatprep.subr.mxu1 %v2280_v39  ;;  %v2285_v23 = vmov 683565275  }
  0x97   :  { %1691 = vmatpush3.msra.mxu0 %v234_v24  ;;  %1824 = vmatpush3.msra.mxu1 %v589_v46 }
  0x98   :  { %1692 = vmatprep.subr.mxu0 %v249_v25  ;;  %1825 = vmatprep.subr.mxu1 %v2280_v39  ;;  %v2286_v25 = vmov 2475754826  }
  0x99   :  { %1693 = vmatpush3.msra.mxu0 %v233_v26  ;;  %1826 = vmatpush3.msra.mxu1 %v588_v47 }
  0x9a   :  { %1694 = vmatprep.subr.mxu0 %v248_v27  ;;  %1827 = vmatprep.subr.mxu1 %v2280_v39 }
  0x9b   :  { %1695 = vmatpush3.msra.mxu0 %v232_v28  ;;  %1828 = vmatpush3.msra.mxu1 %v587_v48  ;;  %v2287_v28 = vmov 2131351028  }
  0x9c   :  { %1696 = vmatprep.subr.mxu0 %v247_v29  ;;  %1829 = vmatprep.subr.mxu1 %v2280_v39 }
  0x9d   :  { %1697 = vmatpush3.msra.mxu0 %v231_v30  ;;  %1830 = vmatpush3.msra.mxu1 %v586_v49 }
  0x9e   :  { %1698 = vmatprep.subr.mxu0 %v246_v31  ;;  %1831 = vmatprep.subr.mxu1 %v2280_v39 }
  0x9f   :  { %1699 = vmatpush3.msra.mxu0 %v230_v32  ;;  %1832 = vmatpush3.msra.mxu1 %v585_v50 }
  0xa0   :  { %1700 = vmatprep.subr.mxu0 %v245_v33  ;;  %1833 = vmatprep.subr.mxu1 %v2280_v39 }
  0xa1   :  { %1701 = vmatpush3.msra.mxu0 %v229_v34  ;;  %1834 = vmatpush3.msra.mxu1 %v584_v51 }
  0xa2   :  { %1702 = vmatprep.subr.mxu0 %v244_v35  ;;  %1835 = vmatprep.subr.mxu1 %v2280_v39 }
  0xa3   :  { %1703 = vmatpush3.msra.mxu0 %v228_v36  ;;  %1836 = vmatpush3.msra.mxu1 %v583_v52 }
  0xa4   :  { %472 = vmatmul.mubr.f32.vlgmr.msra.gmra.mxu0 %v162_v37  ;;  %1844 = vmatprep.subr.mxu0 %v2280_v39 }
  0xa5   :  { %1876 = vmatprep.mubr.msk.f32.mxu0 %vm2281_vm0, %v2280_v39  ;;  %1837 = vmatprep.subr.mxu1 %v2280_v39 }
  0xa6   :  { %1838 = vmatpush3.msra.mxu1 %v582_v53 }
  0xa7   :  { %1839 = vmatprep.subr.mxu1 %v2280_v39 }
  0xa8   :  { %1840 = vmatpush3.msra.mxu1 %v581_v54 }
  0xa9   :  { %1879 = vmatprep.subr.mxu1 %v2280_v39 }
 0x142   :  { %v1634_v55 = vpop.f32.mrf.mxu0 }
 0x144   :  { %v1635_v56 = vpop.f32.mrf.mxu0 }
 0x145   :  { %v1669_v57 = vpop.f32.mrf.mxu1  ;;  %v1636_v58 = vadd.f32 %v1635_v56, %v1634_v55 }
 0x147   :  { %v1670_v60 = vpop.f32.mrf.mxu1  ;;  %v334_v61 = vadd.f32 %v1636_v58, %v1575_v59 }
 0x148   :  { %v1671_v62 = vadd.f32 %v1670_v60, %v1669_v57 }
 0x14a   :  { %v404_v1 = vadd.f32 %v1671_v62, %v334_v61 }
 0x164   :  { %v1704_v63 = vpop.f32.mrf.mxu0 }
 0x166   :  { %v1705_v0 = vpop.f32.mrf.mxu0 }
 0x167   :  { %v1706_v2 = vadd.f32 %v1705_v0, %v1704_v63 }
 0x169   :  { %v2439_v3 = vadd.f32 %v1706_v2, %v404_v1 }
 0x16b   :  { %v480_v4 = vand.u32 2139095040, %v2439_v3  ;;  %v477_v5 = vand.u32 2147483647, %v2439_v3  ;;  %vm479_vm8 = vcmp.lt.s32.totalorder %v2439_v3, 0  ;;  %vm569_vm13 = vweird.f32 %v2439_v3 }
 0x16d   :  { %v481_v6 = vshrl.u32 %v480_v4, 23  ;;  %v484_v8 = vand.u32 8388607, %v477_v5  ;;  %vm478_vm9 = vcmp.le.f32.partialorder %v477_v5, 0.7853982 }
 0x16f   :  { %v1576_v7 = vadd.s32 4294967169, %v481_v6  ;;  %v485_v11 = vor.u32 8388608, %v484_v8 }
 0x171   :  { %v487_v9 = vadd.s32 1, %v1576_v7  ;;  %v525_v19 = vshll.u32 %v485_v11, 8 }
 0x173   :  { %vm488_vm1 = vcmp.gt.s32.totalorder %v487_v9, 0 }
 0x174   :  { %v489_v10 = vsel %vm488_vm1, %v487_v9, 0 }
 0x175   :  { %v491_v12 = vand.u32 31, %v489_v10  ;;  %v490_v13 = vshrl.u32 %v489_v10, 5 }
 0x177   :  { %v492_v14 = vsub.s32 32, %v491_v12  ;;  %v503_v16 = vshll.u32 %v2282_v15, %v491_v12  ;;  %v506_v18 = vshll.u32 %v2283_v17, %v491_v12  ;;  %v494_v24 = vshll.u32 %v2285_v23, %v491_v12 }
 0x178   :  { %v497_v27 = vshll.u32 %v2286_v25, %v491_v12  ;;  %v500_v30 = vshll.u32 %v2287_v28, %v491_v12  ;;  %vm512_vm2 = vcmp.lt.s32.totalorder %v490_v13, 4  ;;  %vm509_vm3 = vcmp.lt.s32.totalorder %v490_v13, 1 }
 0x179   :  { %v504_v20 = vshrl.u32 %v2283_v17, %v492_v14  ;;  %v507_v22 = vshrl.u32 %v2284_v21, %v492_v14  ;;  %v495_v26 = vshrl.u32 %v2286_v25, %v492_v14  ;;  %v498_v29 = vshrl.u32 %v2287_v28, %v492_v14 }
 0x17a   :  { %v501_v31 = vshrl.u32 %v2282_v15, %v492_v14  ;;  %v493_v35 = vshrl.u32 %v2285_v23, %v492_v14  ;;  %vm510_vm4 = vcmp.lt.s32.totalorder %v490_v13, 2  ;;  %vm511_vm5 = vcmp.lt.s32.totalorder %v490_v13, 3 }
 0x17b   :  { %v505_v32 = vor.u32 %v504_v20, %v503_v16  ;;  %v508_v33 = vor.u32 %v507_v22, %v506_v18  ;;  %v496_v34 = vor.u32 %v495_v26, %v494_v24  ;;  %v499_v36 = vor.u32 %v498_v29, %v497_v27 }
 0x17c   :  { %v502_v37 = vor.u32 %v501_v31, %v500_v30 }
 0x17d   :  { %v518_v38 = vsel %vm512_vm2, %v505_v32, 920167782  ;;  %v522_v40 = vsel %vm512_vm2, %v508_v33, 1326507024  ;;  %v517_v42 = vsel %vm509_vm3, %v496_v34, %v499_v36  ;;  %v513_v45 = vsel %vm509_vm3, %v493_v35, %v496_v34 }
 0x17e   :  { %v514_v41 = vsel %vm512_vm2, %v502_v37, 2102212464  ;;  %v519_v43 = vsel %vm511_vm5, %v502_v37, %v518_v38  ;;  %v521_v44 = vsel %vm509_vm3, %v499_v36, %v502_v37  ;;  %v523_v48 = vsel %vm511_vm5, %v505_v32, %v522_v40  ;;  %v793_v40 = vld [vmem:[#allocation8 + $0x78] sm:$0xff] }
 0x17f   :  { %v515_v46 = vsel %vm511_vm5, %v499_v36, %v514_v41  ;;  %v520_v47 = vsel %vm510_vm4, %v517_v42, %v519_v43  ;;  %v524_v49 = vsel %vm510_vm4, %v521_v44, %v523_v48  ;;  %1845 = vmatpush3.msra.mxu0 %v793_v40  ;;  %v792_v41 = vld [vmem:[#allocation8 + $0x70] sm:$0xff]  ;;  %v791_v42 = vld [vmem:[#allocation8 + $0x68] sm:$0xff]  ;;  %v790_v43 = vld [vmem:[#allocation8 + $0x60] sm:$0xff] }
 0x180   :  { %v2456_v50 = vmul.u32.u64.low %v525_v19, %v520_v47  ;;  %v2457_v51 = vmul.u32.u64.high %v525_v19, %v520_v47, %v2456_v50  ;;  %v2459_v52 = vmul.u32.u64.low %v525_v19, %v524_v49  ;;  %v2460_v53 = vmul.u32.u64.high %v525_v19, %v524_v49, %v2459_v52  ;;  %1846 = vmatprep.subr.mxu0 %v2280_v39  ;;  %v788_v44 = vld [vmem:[#allocation8 + $0x50] sm:$0xff]  ;;  %v785_v47 = vld [vmem:[#allocation8 + $0x38] sm:$0xff]  ;;  %v783_v49 = vld [vmem:[#allocation8 + $0x28] sm:$0xff] }
 0x181   :  { %v516_v54 = vsel %vm510_vm4, %v513_v45, %v515_v46  ;;  %1847 = vmatpush3.msra.mxu0 %v792_v41  ;;  %v787_v45 = vld [vmem:[#allocation8 + $0x48] sm:$0xff]  ;;  %v786_v46 = vld [vmem:[#allocation8 + $0x40] sm:$0xff]  ;;  %v784_v48 = vld [vmem:[#allocation8 + $0x30] sm:$0xff] }
 0x182   :  { %v535_v55 = vadd.s32 1, %v2457_v51  ;;  %v532_v56 = vmul.u32 %v525_v19, %v516_v54  ;;  %vm534_vm6 = vc.u32 %v2460_v53, %v2456_v50  ;;  %v533_v6 = vadd.s32 %v2456_v50, %v2460_v53  ;;  %1848 = vmatprep.subr.mxu0 %v2280_v39  ;;  %v782_v50 = vld [vmem:[#allocation8 + $0x20] sm:$0xff]  ;;  %v780_v52 = vld [vmem:[#allocation8 + $0x10] sm:$0xff]  ;;  %v779_v53 = vld [vmem:[#allocation8 + $0x8] sm:$0xff] }
 0x183   :  { %1849 = vmatpush3.msra.mxu0 %v791_v42  ;;  %v778_v54 = vld [vmem:[#allocation8] sm:$0xff] }
 0x184   :  { %v536_v57 = vsel %vm534_vm6, %v535_v55, %v2457_v51  ;;  %1850 = vmatprep.subr.mxu0 %v2280_v39  ;;  %v781_v51 = vld [vmem:[#allocation8 + $0x18] sm:$0xff]  ;;  %v1580_v55 = vld [vmem:[%s2710_s4] ss:$0 sm:$0xff] }
 0x185   :  { %v537_v58 = vadd.s32 %v536_v57, %v532_v56  ;;  %1851 = vmatpush3.msra.mxu0 %v790_v43 }
 0x186   :  { %1852 = vmatprep.subr.mxu0 %v2280_v39 }
 0x187   :  { %v538_v59 = vadd.s32 536870912, %v537_v58 }
 0x189   :  { %v539_v60 = vshrl.u32 %v538_v59, 30 }
 0x18b   :  { %v540_v61 = vshll.u32 %v539_v60, 30  ;;  %v563_v22 = vsub.s32 4, %v539_v60 }
 0x18d   :  { %v541_v62 = vsub.s32 %v537_v58, %v540_v61  ;;  %v564_v27 = vsel %vm479_vm8, %v563_v22, %v539_v60 }
 0x18e   :  { %v566_v29 = vsel %vm478_vm9, 0, %v564_v27 }
 0x18f   :  { %v543_v63 = vsub.s32 0, %v541_v62  ;;  %v570_v30 = vadd.s32 3, %v566_v29 }
 0x191   :  { %v1577_v0 = vmin.u32 %v543_v63, %v541_v62  ;;  %v571_v31 = vand.u32 3, %v570_v30 }
 0x193   :  { %v545_v1 = vclz %v1577_v0  ;;  %vm576_vm10 = vcmp.eq.s32.totalorder %v571_v31, 2  ;;  %vm573_vm11 = vcmp.eq.s32.totalorder %v571_v31, 0  ;;  %vm572_vm12 = vcmp.lt.s32.totalorder %v571_v31, 2 }
 0x195   :  { %v1578_v2 = vadd.s32 4294967294, %v545_v1 }
 0x197   :  { %vm1579_vm7 = vcmp.lt.s32.totalorder %v1578_v2, 0 }
 0x198   :  { %v548_v4 = vsel %vm1579_vm7, 0, %v1578_v2 }
 0x199   :  { %v549_v7 = vsub.s32 32, %v548_v4  ;;  %v553_v8 = vsub.s32 4294967266, %v548_v4  ;;  %v550_v9 = vshll.u32 %v541_v62, %v548_v4 }
 0x19b   :  { %v551_v10 = vshrl.u32 %v533_v6, %v549_v7  ;;  %v554_v11 = vadd.s32 127, %v553_v8 }
 0x19d   :  { %v552_v12 = vor.u32 %v551_v10, %v550_v9  ;;  %v555_v13 = vshll.u32 %v554_v11, 23 }
 0x19f   :  { %v556_v14 = vor.u32 4788187, %v555_v13  ;;  %v559_v18 = vcvt.s32.f32 %v552_v12 }
 0x1a1   :  { %v557_v16 = vand.u32 2147483647, %v556_v14 }
 0x1a3   :  { %v560_v19 = vmul.f32 %v559_v18, %v557_v16 }
 0x1a5   :  { %v561_v20 = vxor.u32 2147483648, %v560_v19 }
 0x1a7   :  { %v562_v24 = vsel %vm479_vm8, %v561_v20, %v560_v19 }
 0x1a8   :  { %v565_v26 = vsel %vm478_vm9, %v2439_v3, %v562_v24  ;;  %v789_v3 = vld [vmem:[#allocation8 + $0x58] sm:$0xff] }
 0x1a9   :  { %2058 = vcosq.f32 %v565_v26  ;;  %1853 = vmatpush3.msra.mxu0 %v789_v3 }
 0x1aa   :  { %2060 = vsinq.f32 %v565_v26  ;;  %1854 = vmatprep.subr.mxu0 %v2280_v39 }
 0x1ab   :  { %1855 = vmatpush3.msra.mxu0 %v788_v44 }
 0x1ac   :  { %1856 = vmatprep.subr.mxu0 %v2280_v39 }
 0x1ad   :  { %1857 = vmatpush3.msra.mxu0 %v787_v45 }
 0x1ae   :  { %1858 = vmatprep.subr.mxu0 %v2280_v39 }
 0x1af   :  { %1859 = vmatpush3.msra.mxu0 %v786_v46 }
 0x1b0   :  { %1860 = vmatprep.subr.mxu0 %v2280_v39 }
 0x1b1   :  { %1861 = vmatpush3.msra.mxu0 %v785_v47 }
 0x1b2   :  { %1862 = vmatprep.subr.mxu0 %v2280_v39 }
 0x1b3   :  { %1863 = vmatpush3.msra.mxu0 %v784_v48 }
 0x1b4   :  { %1864 = vmatprep.subr.mxu0 %v2280_v39 }
 0x1b5   :  { %1865 = vmatpush3.msra.mxu0 %v783_v49 }
 0x1b6   :  { %v2059_v32 = vpop.eup %2058  ;;  %1866 = vmatprep.subr.mxu0 %v2280_v39 }
 0x1b7   :  { %v2061_v33 = vpop.eup %2060  ;;  %v577_v34 = vxor.u32 2147483648, %v2059_v32  ;;  %1867 = vmatpush3.msra.mxu0 %v782_v50 }
 0x1b8   :  { %v574_v35 = vxor.u32 2147483648, %v2061_v33  ;;  %1868 = vmatprep.subr.mxu0 %v2280_v39 }
 0x1b9   :  { %v578_v36 = vsel %vm576_vm10, %v577_v34, %v2061_v33  ;;  %1869 = vmatpush3.msra.mxu0 %v781_v51 }
 0x1ba   :  { %v575_v37 = vsel %vm573_vm11, %v2059_v32, %v574_v35  ;;  %1870 = vmatprep.subr.mxu0 %v2280_v39 }
 0x1bb   :  { %v579_v5 = vsel %vm572_vm12, %v575_v37, %v578_v36  ;;  %1871 = vmatpush3.msra.mxu0 %v780_v52 }
 0x1bc   :  { %v580_v38 = vsel %vm569_vm13, nan, %v579_v5  ;;  %1872 = vmatprep.subr.mxu0 %v2280_v39 }
 0x1bd   :  { %1842 = vmatmul.mubr.f32.vlgmr.msra.gmra.mxu1 %v580_v38  ;;  %1873 = vmatpush3.msra.mxu0 %v779_v53 }
 0x1be   :  { %1911 = vmatprep.mubr.msk.f32.mxu1 %vm2281_vm0, %v2280_v39  ;;  %1874 = vmatprep.subr.mxu0 %v2280_v39 }
 0x1bf   :  { %1875 = vmatpush3.msra.mxu0 %v778_v54 }
 0x1c0   :  { %1914 = vmatprep.subr.mxu0 %v2280_v39 }
 0x27d   :  { %v670_v56 = vpop.f32.mrf.mxu1 }
 0x27e   :  { %v2492_v57 = vadd.f32 %v1580_v55, %v670_v56 }
 0x27f   :  { %v1843_v58 = vpop.f32.mrf.mxu1 }
 0x280   :  { %v677_v59 = vand.u32 2139095040, %v2492_v57  ;;  %v674_v63 = vand.u32 2147483647, %v2492_v57  ;;  %vm676_vm6 = vcmp.lt.s32.totalorder %v2492_v57, 0  ;;  %vm766_vm11 = vweird.f32 %v2492_v57 }
 0x282   :  { %v678_v60 = vshrl.u32 %v677_v59, 23  ;;  %v681_v2 = vand.u32 8388607, %v674_v63  ;;  %vm675_vm7 = vcmp.le.f32.partialorder %v674_v63, 0.7853982 }
 0x284   :  { %v1581_v61 = vadd.s32 4294967169, %v678_v60  ;;  %v682_v19 = vor.u32 8388608, %v681_v2 }
 0x286   :  { %v684_v62 = vadd.s32 1, %v1581_v61  ;;  %v722_v37 = vshll.u32 %v682_v19, 8 }
 0x288   :  { %vm685_vm14 = vcmp.gt.s32.totalorder %v684_v62, 0 }
 0x289   :  { %v686_v0 = vsel %vm685_vm14, %v684_v62, 0 }
 0x28a   :  { %v688_v1 = vand.u32 31, %v686_v0  ;;  %v687_v6 = vshrl.u32 %v686_v0, 5 }
 0x28c   :  { %v689_v4 = vsub.s32 32, %v688_v1  ;;  %v691_v7 = vshll.u32 %v2285_v23, %v688_v1  ;;  %v694_v8 = vshll.u32 %v2286_v25, %v688_v1  ;;  %v697_v11 = vshll.u32 %v2287_v28, %v688_v1 }
 0x28d   :  { %v700_v13 = vshll.u32 %v2282_v15, %v688_v1  ;;  %v703_v16 = vshll.u32 %v2283_v17, %v688_v1  ;;  %vm706_vm15 = vcmp.lt.s32.totalorder %v687_v6, 1  ;;  %vm709_vm1 = vcmp.lt.s32.totalorder %v687_v6, 4 }
 0x28e   :  { %v692_v9 = vshrl.u32 %v2286_v25, %v689_v4  ;;  %v695_v10 = vshrl.u32 %v2287_v28, %v689_v4  ;;  %v698_v12 = vshrl.u32 %v2282_v15, %v689_v4  ;;  %v701_v14 = vshrl.u32 %v2283_v17, %v689_v4 }
 0x28f   :  { %v704_v18 = vshrl.u32 %v2284_v21, %v689_v4  ;;  %v690_v32 = vshrl.u32 %v2285_v23, %v689_v4  ;;  %vm708_vm2 = vcmp.lt.s32.totalorder %v687_v6, 3  ;;  %vm707_vm3 = vcmp.lt.s32.totalorder %v687_v6, 2 }
 0x290   :  { %v693_v20 = vor.u32 %v692_v9, %v691_v7  ;;  %v696_v22 = vor.u32 %v695_v10, %v694_v8  ;;  %v699_v24 = vor.u32 %v698_v12, %v697_v11  ;;  %v702_v26 = vor.u32 %v701_v14, %v700_v13 }
 0x291   :  { %v705_v27 = vor.u32 %v704_v18, %v703_v16 }
 0x292   :  { %v711_v29 = vsel %vm709_vm1, %v699_v24, 2102212464  ;;  %v714_v30 = vsel %vm706_vm15, %v693_v20, %v696_v22  ;;  %v718_v31 = vsel %vm706_vm15, %v696_v22, %v699_v24  ;;  %v715_v33 = vsel %vm709_vm1, %v702_v26, 920167782 }
 0x293   :  { %v719_v34 = vsel %vm709_vm1, %v705_v27, 1326507024  ;;  %v716_v35 = vsel %vm708_vm2, %v699_v24, %v715_v33  ;;  %v710_v5 = vsel %vm706_vm15, %v690_v32, %v693_v20  ;;  %v712_v38 = vsel %vm708_vm2, %v696_v22, %v711_v29  ;;  %v990_v32 = vld [vmem:[#allocation10 + $0x78] sm:$0xff]  ;;  %v989_v33 = vld [vmem:[#allocation10 + $0x70] sm:$0xff] }
 0x294   :  { %v720_v36 = vsel %vm708_vm2, %v702_v26, %v719_v34  ;;  %v717_v40 = vsel %vm707_vm3, %v714_v30, %v716_v35  ;;  %v713_v45 = vsel %vm707_vm3, %v710_v5, %v712_v38  ;;  %1880 = vmatpush3.msra.mxu1 %v990_v32  ;;  %v988_v34 = vld [vmem:[#allocation10 + $0x68] sm:$0xff]  ;;  %v987_v35 = vld [vmem:[#allocation10 + $0x60] sm:$0xff]  ;;  %v982_v38 = vld [vmem:[#allocation10 + $0x38] sm:$0xff] }
 0x295   :  { %v721_v41 = vsel %vm707_vm3, %v718_v31, %v720_v36  ;;  %v2512_v3 = vmul.u32.u64.low %v722_v37, %v717_v40  ;;  %v2513_v44 = vmul.u32.u64.high %v722_v37, %v717_v40, %v2512_v3  ;;  %v729_v47 = vmul.u32 %v722_v37, %v713_v45  ;;  %1881 = vmatprep.subr.mxu1 %v2280_v39  ;;  %v985_v36 = vld [vmem:[#allocation10 + $0x50] sm:$0xff]  ;;  %v983_v5 = vld [vmem:[#allocation10 + $0x40] sm:$0xff] }
 0x296   :  { %v2509_v42 = vmul.u32.u64.low %v722_v37, %v721_v41  ;;  %v2510_v43 = vmul.u32.u64.high %v722_v37, %v721_v41, %v2509_v42  ;;  %1882 = vmatpush3.msra.mxu1 %v989_v33  ;;  %v984_v37 = vld [vmem:[#allocation10 + $0x48] sm:$0xff]  ;;  %v981_v40 = vld [vmem:[#allocation10 + $0x30] sm:$0xff]  ;;  %v975_v45 = vld [vmem:[#allocation10] sm:$0xff] }
 0x297   :  { %v732_v46 = vadd.s32 1, %v2513_v44  ;;  %1883 = vmatprep.subr.mxu1 %v2280_v39  ;;  %v980_v41 = vld [vmem:[#allocation10 + $0x28] sm:$0xff]  ;;  %v979_v42 = vld [vmem:[#allocation10 + $0x20] sm:$0xff] }
 0x298   :  { %vm731_vm4 = vc.u32 %v2510_v43, %v2512_v3  ;;  %v730_v60 = vadd.s32 %v2512_v3, %v2510_v43  ;;  %1884 = vmatpush3.msra.mxu1 %v988_v34  ;;  %v978_v43 = vld [vmem:[#allocation10 + $0x18] sm:$0xff]  ;;  %v977_v3 = vld [vmem:[#allocation10 + $0x10] sm:$0xff] }
 0x299   :  { %v733_v48 = vsel %vm731_vm4, %v732_v46, %v2513_v44  ;;  %1885 = vmatprep.subr.mxu1 %v2280_v39  ;;  %v976_v44 = vld [vmem:[#allocation10 + $0x8] sm:$0xff]  ;;  %v1083_v46 = vld [vmem:[#allocation11 + $0x78] sm:$0xff] }
 0x29a   :  { %v734_v49 = vadd.s32 %v733_v48, %v729_v47  ;;  %1886 = vmatpush3.msra.mxu1 %v987_v35  ;;  %v1082_v47 = vld [vmem:[#allocation11 + $0x70] sm:$0xff]  ;;  %v1081_v48 = vld [vmem:[#allocation11 + $0x68] sm:$0xff] }
 0x29b   :  { %1887 = vmatprep.subr.mxu1 %v2280_v39 }
 0x29c   :  { %v735_v50 = vadd.s32 536870912, %v734_v49 }
 0x29e   :  { %v736_v51 = vshrl.u32 %v735_v50, 30  ;;  %v1079_v50 = vld [vmem:[#allocation11 + $0x58] sm:$0xff] }
 0x2a0   :  { %v737_v52 = vshll.u32 %v736_v51, 30  ;;  %v760_v12 = vsub.s32 4, %v736_v51 }
 0x2a2   :  { %v738_v53 = vsub.s32 %v734_v49, %v737_v52  ;;  %v761_v16 = vsel %vm676_vm6, %v760_v12, %v736_v51  ;;  %v1080_v49 = vld [vmem:[#allocation11 + $0x60] sm:$0xff]  ;;  %v1078_v51 = vld [vmem:[#allocation11 + $0x50] sm:$0xff]  ;;  %v1077_v52 = vld [vmem:[#allocation11 + $0x48] sm:$0xff] }
 0x2a3   :  { %v763_v18 = vsel %vm675_vm7, 0, %v761_v16 }
 0x2a4   :  { %v740_v54 = vsub.s32 0, %v738_v53  ;;  %v767_v19 = vadd.s32 3, %v763_v18 }
 0x2a6   :  { %v1582_v55 = vmin.u32 %v740_v54, %v738_v53  ;;  %v768_v20 = vand.u32 3, %v767_v19  ;;  %v1075_v54 = vld [vmem:[#allocation11 + $0x38] sm:$0xff] }
 0x2a8   :  { %v742_v56 = vclz %v1582_v55  ;;  %vm773_vm8 = vcmp.eq.s32.totalorder %v768_v20, 2  ;;  %vm770_vm9 = vcmp.eq.s32.totalorder %v768_v20, 0  ;;  %vm769_vm10 = vcmp.lt.s32.totalorder %v768_v20, 2  ;;  %v1074_v55 = vld [vmem:[#allocation11 + $0x30] sm:$0xff] }
 0x2aa   :  { %v1583_v58 = vadd.s32 4294967294, %v742_v56  ;;  %v1073_v56 = vld [vmem:[#allocation11 + $0x28] sm:$0xff] }
 0x2ac   :  { %vm1584_vm5 = vcmp.lt.s32.totalorder %v1583_v58, 0 }
 0x2ad   :  { %v745_v59 = vsel %vm1584_vm5, 0, %v1583_v58  ;;  %v1072_v58 = vld [vmem:[#allocation11 + $0x20] sm:$0xff] }
 0x2ae   :  { %v746_v61 = vsub.s32 32, %v745_v59  ;;  %v750_v62 = vsub.s32 4294967266, %v745_v59  ;;  %v747_v0 = vshll.u32 %v738_v53, %v745_v59  ;;  %v1076_v53 = vld [vmem:[#allocation11 + $0x40] sm:$0xff]  ;;  %v1071_v59 = vld [vmem:[#allocation11 + $0x18] sm:$0xff] }
 0x2b0   :  { %v748_v1 = vshrl.u32 %v730_v60, %v746_v61  ;;  %v751_v2 = vadd.s32 127, %v750_v62  ;;  %v1070_v60 = vld [vmem:[#allocation11 + $0x10] sm:$0xff] }
 0x2b1   :  { %v1585_v61 = vld [vmem:[%s2712_s6] ss:$0 sm:$0xff] }
 0x2b2   :  { %v749_v4 = vor.u32 %v748_v1, %v747_v0  ;;  %v752_v6 = vshll.u32 %v751_v2, 23 }
 0x2b4   :  { %v753_v7 = vor.u32 4788187, %v752_v6  ;;  %v756_v9 = vcvt.s32.f32 %v749_v4 }
 0x2b6   :  { %v754_v8 = vand.u32 2147483647, %v753_v7 }
 0x2b8   :  { %v757_v10 = vmul.f32 %v756_v9, %v754_v8 }
 0x2ba   :  { %v758_v11 = vxor.u32 2147483648, %v757_v10 }
 0x2bc   :  { %v759_v13 = vsel %vm676_vm6, %v758_v11, %v757_v10 }
 0x2bd   :  { %v762_v14 = vsel %vm675_vm7, %v2492_v57, %v759_v13  ;;  %v986_v57 = vld [vmem:[#allocation10 + $0x58] sm:$0xff] }
 0x2be   :  { %2062 = vcosq.f32 %v762_v14  ;;  %1888 = vmatpush3.msra.mxu1 %v986_v57 }
 0x2bf   :  { %2064 = vsinq.f32 %v762_v14  ;;  %1889 = vmatprep.subr.mxu1 %v2280_v39 }
 0x2c0   :  { %1890 = vmatpush3.msra.mxu1 %v985_v36 }
 0x2c1   :  { %1891 = vmatprep.subr.mxu1 %v2280_v39 }
 0x2c2   :  { %1892 = vmatpush3.msra.mxu1 %v984_v37 }
 0x2c3   :  { %1893 = vmatprep.subr.mxu1 %v2280_v39 }
 0x2c4   :  { %1894 = vmatpush3.msra.mxu1 %v983_v5 }
 0x2c5   :  { %1895 = vmatprep.subr.mxu1 %v2280_v39 }
 0x2c6   :  { %1896 = vmatpush3.msra.mxu1 %v982_v38 }
 0x2c7   :  { %1897 = vmatprep.subr.mxu1 %v2280_v39 }
 0x2c8   :  { %1898 = vmatpush3.msra.mxu1 %v981_v40 }
 0x2c9   :  { %1899 = vmatprep.subr.mxu1 %v2280_v39 }
 0x2ca   :  { %1900 = vmatpush3.msra.mxu1 %v980_v41 }
 0x2cb   :  { %v2063_v22 = vpop.eup %2062  ;;  %1901 = vmatprep.subr.mxu1 %v2280_v39 }
 0x2cc   :  { %v2065_v24 = vpop.eup %2064  ;;  %v774_v26 = vxor.u32 2147483648, %v2063_v22  ;;  %1902 = vmatpush3.msra.mxu1 %v979_v42 }
 0x2cd   :  { %v771_v27 = vxor.u32 2147483648, %v2065_v24  ;;  %1903 = vmatprep.subr.mxu1 %v2280_v39 }
 0x2ce   :  { %v775_v29 = vsel %vm773_vm8, %v774_v26, %v2065_v24  ;;  %1904 = vmatpush3.msra.mxu1 %v978_v43 }
 0x2cf   :  { %v772_v30 = vsel %vm770_vm9, %v2063_v22, %v771_v27  ;;  %1905 = vmatprep.subr.mxu1 %v2280_v39 }
 0x2d0   :  { %v776_v63 = vsel %vm769_vm10, %v772_v30, %v775_v29  ;;  %1906 = vmatpush3.msra.mxu1 %v977_v3 }
 0x2d1   :  { %v777_v31 = vsel %vm766_vm11, nan, %v776_v63  ;;  %1907 = vmatprep.subr.mxu1 %v2280_v39 }
 0x2d2   :  { %1877 = vmatmul.mubr.f32.vlgmr.msra.gmra.mxu0 %v777_v31  ;;  %1908 = vmatpush3.msra.mxu1 %v976_v44 }
 0x2d3   :  { %1946 = vmatprep.mubr.msk.f32.mxu0 %vm2281_vm0, %v2280_v39  ;;  %1909 = vmatprep.subr.mxu1 %v2280_v39 }
 0x2d4   :  { %1910 = vmatpush3.msra.mxu1 %v975_v45  ;;  %1915 = vmatpush3.msra.mxu0 %v1083_v46 }
 0x2d5   :  { %1949 = vmatprep.subr.mxu1 %v2280_v39  ;;  %1916 = vmatprep.subr.mxu0 %v2280_v39 }
 0x2d6   :  { %1917 = vmatpush3.msra.mxu0 %v1082_v47 }
 0x2d7   :  { %1918 = vmatprep.subr.mxu0 %v2280_v39 }
 0x2d8   :  { %1919 = vmatpush3.msra.mxu0 %v1081_v48 }
 0x2d9   :  { %1920 = vmatprep.subr.mxu0 %v2280_v39 }
 0x2da   :  { %1921 = vmatpush3.msra.mxu0 %v1080_v49 }
 0x2db   :  { %1922 = vmatprep.subr.mxu0 %v2280_v39 }
 0x2dc   :  { %1923 = vmatpush3.msra.mxu0 %v1079_v50 }
 0x2dd   :  { %1924 = vmatprep.subr.mxu0 %v2280_v39 }
 0x2de   :  { %1925 = vmatpush3.msra.mxu0 %v1078_v51 }
 0x2df   :  { %1926 = vmatprep.subr.mxu0 %v2280_v39 }
 0x2e0   :  { %1927 = vmatpush3.msra.mxu0 %v1077_v52 }
 0x2e1   :  { %1928 = vmatprep.subr.mxu0 %v2280_v39 }
 0x2e2   :  { %1929 = vmatpush3.msra.mxu0 %v1076_v53 }
 0x2e3   :  { %1930 = vmatprep.subr.mxu0 %v2280_v39 }
 0x2e4   :  { %1931 = vmatpush3.msra.mxu0 %v1075_v54 }
 0x2e5   :  { %1932 = vmatprep.subr.mxu0 %v2280_v39 }
 0x2e6   :  { %1933 = vmatpush3.msra.mxu0 %v1074_v55 }
 0x2e7   :  { %1934 = vmatprep.subr.mxu0 %v2280_v39 }
 0x2e8   :  { %1935 = vmatpush3.msra.mxu0 %v1073_v56 }
 0x2e9   :  { %1936 = vmatprep.subr.mxu0 %v2280_v39 }
 0x2ea   :  { %1937 = vmatpush3.msra.mxu0 %v1072_v58 }
 0x2eb   :  { %1938 = vmatprep.subr.mxu0 %v2280_v39 }
 0x2ec   :  { %1939 = vmatpush3.msra.mxu0 %v1071_v59 }
 0x2ed   :  { %1940 = vmatprep.subr.mxu0 %v2280_v39 }
 0x2ee   :  { %1941 = vmatpush3.msra.mxu0 %v1070_v60 }
 0x2ef   :  { %1942 = vmatprep.subr.mxu0 %v2280_v39 }
 0x392   :  { %v867_v62 = vpop.f32.mrf.mxu0 }
 0x393   :  { %v2559_v0 = vadd.f32 %v1585_v61, %v867_v62 }
 0x394   :  { %v1878_v1 = vpop.f32.mrf.mxu0 }
 0x395   :  { %v874_v2 = vand.u32 2139095040, %v2559_v0  ;;  %v871_v8 = vand.u32 2147483647, %v2559_v0  ;;  %vm873_vm4 = vcmp.lt.s32.totalorder %v2559_v0, 0  ;;  %vm963_vm9 = vweird.f32 %v2559_v0 }
 0x397   :  { %v875_v4 = vshrl.u32 %v874_v2, 23  ;;  %v878_v11 = vand.u32 8388607, %v871_v8  ;;  %vm872_vm5 = vcmp.le.f32.partialorder %v871_v8, 0.7853982 }
 0x399   :  { %v1586_v6 = vadd.s32 4294967169, %v875_v4  ;;  %v879_v30 = vor.u32 8388608, %v878_v11 }
 0x39b   :  { %v881_v7 = vadd.s32 1, %v1586_v6  ;;  %v919_v42 = vshll.u32 %v879_v30, 8 }
 0x39d   :  { %vm882_vm12 = vcmp.gt.s32.totalorder %v881_v7, 0 }
 0x39e   :  { %v883_v9 = vsel %vm882_vm12, %v881_v7, 0 }
 0x39f   :  { %v885_v10 = vand.u32 31, %v883_v9  ;;  %v884_v13 = vshrl.u32 %v883_v9, 5 }
 0x3a1   :  { %v886_v12 = vsub.s32 32, %v885_v10  ;;  %v888_v14 = vshll.u32 %v2285_v23, %v885_v10  ;;  %v891_v16 = vshll.u32 %v2286_v25, %v885_v10  ;;  %v894_v20 = vshll.u32 %v2287_v28, %v885_v10 }
 0x3a2   :  { %v897_v24 = vshll.u32 %v2282_v15, %v885_v10  ;;  %v900_v27 = vshll.u32 %v2283_v17, %v885_v10  ;;  %vm903_vm13 = vcmp.lt.s32.totalorder %v884_v13, 1  ;;  %vm906_vm14 = vcmp.lt.s32.totalorder %v884_v13, 4 }
 0x3a3   :  { %v889_v18 = vshrl.u32 %v2286_v25, %v886_v12  ;;  %v892_v19 = vshrl.u32 %v2287_v28, %v886_v12  ;;  %v895_v22 = vshrl.u32 %v2282_v15, %v886_v12  ;;  %v898_v26 = vshrl.u32 %v2283_v17, %v886_v12 }
 0x3a4   :  { %v901_v29 = vshrl.u32 %v2284_v21, %v886_v12  ;;  %v887_v37 = vshrl.u32 %v2285_v23, %v886_v12  ;;  %vm905_vm15 = vcmp.lt.s32.totalorder %v884_v13, 3  ;;  %vm904_vm1 = vcmp.lt.s32.totalorder %v884_v13, 2 }
 0x3a5   :  { %v890_v63 = vor.u32 %v889_v18, %v888_v14  ;;  %v893_v31 = vor.u32 %v892_v19, %v891_v16  ;;  %v896_v32 = vor.u32 %v895_v22, %v894_v20  ;;  %v899_v33 = vor.u32 %v898_v26, %v897_v24 }
 0x3a6   :  { %v902_v34 = vor.u32 %v901_v29, %v900_v27 }
 0x3a7   :  { %v908_v35 = vsel %vm906_vm14, %v896_v32, 2102212464  ;;  %v911_v57 = vsel %vm903_vm13, %v890_v63, %v893_v31  ;;  %v915_v36 = vsel %vm903_vm13, %v893_v31, %v896_v32  ;;  %v912_v5 = vsel %vm906_vm14, %v899_v33, 920167782 }
 0x3a8   :  { %v916_v38 = vsel %vm906_vm14, %v902_v34, 1326507024  ;;  %v913_v40 = vsel %vm905_vm15, %v896_v32, %v912_v5  ;;  %v907_v43 = vsel %vm903_vm13, %v887_v37, %v890_v63  ;;  %v909_v3 = vsel %vm905_vm15, %v893_v31, %v908_v35  ;;  %v1069_v37 = vld [vmem:[#allocation11 + $0x8] sm:$0xff]  ;;  %v1068_v5 = vld [vmem:[#allocation11] sm:$0xff] }
 0x3a9   :  { %v917_v41 = vsel %vm905_vm15, %v899_v33, %v916_v38  ;;  %v914_v44 = vsel %vm904_vm1, %v911_v57, %v913_v40  ;;  %v910_v50 = vsel %vm904_vm1, %v907_v43, %v909_v3  ;;  %1943 = vmatpush3.msra.mxu0 %v1069_v37  ;;  %v1590_v38 = vld [vmem:[%s2714_s8] ss:$0 sm:$0xff]  ;;  %v1278_v3 = vld [vmem:[#allocation13 + $0x68] sm:$0xff] }
 0x3aa   :  { %v918_v45 = vsel %vm904_vm1, %v915_v36, %v917_v41  ;;  %v2579_v48 = vmul.u32.u64.low %v919_v42, %v914_v44  ;;  %v2580_v49 = vmul.u32.u64.high %v919_v42, %v914_v44, %v2579_v48  ;;  %v926_v52 = vmul.u32 %v919_v42, %v910_v50  ;;  %1944 = vmatprep.subr.mxu0 %v2280_v39  ;;  %v1279_v43 = vld [vmem:[#allocation13 + $0x70] sm:$0xff]  ;;  %v1277_v44 = vld [vmem:[#allocation13 + $0x60] sm:$0xff] }
 0x3ab   :  { %v2576_v46 = vmul.u32.u64.low %v919_v42, %v918_v45  ;;  %v2577_v47 = vmul.u32.u64.high %v919_v42, %v918_v45, %v2576_v46  ;;  %1945 = vmatpush3.msra.mxu0 %v1068_v5  ;;  %v1280_v42 = vld [vmem:[#allocation13 + $0x78] sm:$0xff]  ;;  %v1271_v50 = vld [vmem:[#allocation13 + $0x30] sm:$0xff] }
 0x3ac   :  { %v929_v51 = vadd.s32 1, %v2580_v49  ;;  %1984 = vmatprep.subr.mxu0 %v2280_v39  ;;  %v1276_v45 = vld [vmem:[#allocation13 + $0x58] sm:$0xff]  ;;  %v1275_v46 = vld [vmem:[#allocation13 + $0x50] sm:$0xff] }
 0x3ad   :  { %vm928_vm2 = vc.u32 %v2577_v47, %v2579_v48  ;;  %v927_v4 = vadd.s32 %v2579_v48, %v2577_v47  ;;  %v1274_v47 = vld [vmem:[#allocation13 + $0x48] sm:$0xff]  ;;  %v1273_v48 = vld [vmem:[#allocation13 + $0x40] sm:$0xff] }
 0x3ae   :  { %v930_v53 = vsel %vm928_vm2, %v929_v51, %v2580_v49  ;;  %v1272_v49 = vld [vmem:[#allocation13 + $0x38] sm:$0xff]  ;;  %v1270_v51 = vld [vmem:[#allocation13 + $0x28] sm:$0xff] }
 0x3af   :  { %v931_v54 = vadd.s32 %v930_v53, %v926_v52  ;;  %v1269_v52 = vld [vmem:[#allocation13 + $0x20] sm:$0xff]  ;;  %v1268_v53 = vld [vmem:[#allocation13 + $0x18] sm:$0xff] }
 0x3b1   :  { %v932_v55 = vadd.s32 536870912, %v931_v54 }
 0x3b3   :  { %v933_v56 = vshrl.u32 %v932_v55, 30  ;;  %v1266_v55 = vld [vmem:[#allocation13 + $0x8] sm:$0xff] }
 0x3b5   :  { %v934_v58 = vshll.u32 %v933_v56, 30  ;;  %v957_v22 = vsub.s32 4, %v933_v56 }
 0x3b7   :  { %v935_v59 = vsub.s32 %v931_v54, %v934_v58  ;;  %v958_v27 = vsel %vm873_vm4, %v957_v22, %v933_v56  ;;  %v1267_v54 = vld [vmem:[#allocation13 + $0x10] sm:$0xff]  ;;  %v1265_v56 = vld [vmem:[#allocation13] sm:$0xff] }
 0x3b8   :  { %v960_v29 = vsel %vm872_vm5, 0, %v958_v27  ;;  %v1591_v58 = vld [vmem:[%s2716_s10] ss:$0 sm:$0xff] }
 0x3b9   :  { %v937_v60 = vsub.s32 0, %v935_v59  ;;  %v964_v30 = vadd.s32 3, %v960_v29 }
 0x3bb   :  { %v1587_v61 = vmin.u32 %v937_v60, %v935_v59  ;;  %v965_v63 = vand.u32 3, %v964_v30 }
 0x3bd   :  { %v939_v62 = vclz %v1587_v61  ;;  %vm970_vm6 = vcmp.eq.s32.totalorder %v965_v63, 2  ;;  %vm967_vm7 = vcmp.eq.s32.totalorder %v965_v63, 0  ;;  %vm966_vm8 = vcmp.lt.s32.totalorder %v965_v63, 2 }
 0x3bf   :  { %v1588_v1 = vadd.s32 4294967294, %v939_v62 }
 0x3c1   :  { %vm1589_vm3 = vcmp.lt.s32.totalorder %v1588_v1, 0 }
 0x3c2   :  { %v942_v2 = vsel %vm1589_vm3, 0, %v1588_v1 }
 0x3c3   :  { %v943_v6 = vsub.s32 32, %v942_v2  ;;  %v947_v7 = vsub.s32 4294967266, %v942_v2  ;;  %v944_v9 = vshll.u32 %v935_v59, %v942_v2 }
 0x3c5   :  { %v945_v10 = vshrl.u32 %v927_v4, %v943_v6  ;;  %v948_v11 = vadd.s32 127, %v947_v7 }
 0x3c7   :  { %v946_v12 = vor.u32 %v945_v10, %v944_v9  ;;  %v949_v13 = vshll.u32 %v948_v11, 23 }
 0x3c9   :  { %v950_v14 = vor.u32 4788187, %v949_v13  ;;  %v953_v18 = vcvt.s32.f32 %v946_v12 }
 0x3cb   :  { %v951_v16 = vand.u32 2147483647, %v950_v14 }
 0x3cd   :  { %v954_v19 = vmul.f32 %v953_v18, %v951_v16 }
 0x3cf   :  { %v955_v20 = vxor.u32 2147483648, %v954_v19 }
 0x3d1   :  { %v956_v24 = vsel %vm873_vm4, %v955_v20, %v954_v19 }
 0x3d2   :  { %v959_v26 = vsel %vm872_vm5, %v2559_v0, %v956_v24 }
 0x3d3   :  { %2066 = vcosq.f32 %v959_v26 }
 0x3d4   :  { %2068 = vsinq.f32 %v959_v26 }
 0x3e0   :  { %v2067_v31 = vpop.eup %2066 }
 0x3e1   :  { %v2069_v32 = vpop.eup %2068  ;;  %v971_v33 = vxor.u32 2147483648, %v2067_v31 }
 0x3e2   :  { %v968_v34 = vxor.u32 2147483648, %v2069_v32 }
 0x3e3   :  { %v972_v35 = vsel %vm970_vm6, %v971_v33, %v2069_v32 }
 0x3e4   :  { %v969_v57 = vsel %vm967_vm7, %v2067_v31, %v968_v34 }
 0x3e5   :  { %v973_v8 = vsel %vm966_vm8, %v969_v57, %v972_v35 }
 0x3e6   :  { %v974_v36 = vsel %vm963_vm9, nan, %v973_v8 }
 0x3e7   :  { %1912 = vmatmul.mubr.f32.vlgmr.msra.gmra.mxu1 %v974_v36 }
 0x3e8   :  { %1981 = vmatprep.mubr.msk.f32.mxu1 %vm2281_vm0, %v2280_v39  ;;  %1950 = vmatpush3.msra.mxu1 %v1280_v42 }
 0x3e9   :  { %1951 = vmatprep.subr.mxu1 %v2280_v39 }
 0x3ea   :  { %1952 = vmatpush3.msra.mxu1 %v1279_v43 }
 0x3eb   :  { %1953 = vmatprep.subr.mxu1 %v2280_v39 }
 0x3ec   :  { %1954 = vmatpush3.msra.mxu1 %v1278_v3 }
 0x3ed   :  { %1955 = vmatprep.subr.mxu1 %v2280_v39 }
 0x3ee   :  { %1956 = vmatpush3.msra.mxu1 %v1277_v44 }
 0x3ef   :  { %1957 = vmatprep.subr.mxu1 %v2280_v39 }
 0x3f0   :  { %1958 = vmatpush3.msra.mxu1 %v1276_v45 }
 0x3f1   :  { %1959 = vmatprep.subr.mxu1 %v2280_v39 }
 0x3f2   :  { %1960 = vmatpush3.msra.mxu1 %v1275_v46 }
 0x3f3   :  { %1961 = vmatprep.subr.mxu1 %v2280_v39 }
 0x3f4   :  { %1962 = vmatpush3.msra.mxu1 %v1274_v47 }
 0x3f5   :  { %1963 = vmatprep.subr.mxu1 %v2280_v39 }
 0x3f6   :  { %1964 = vmatpush3.msra.mxu1 %v1273_v48 }
 0x3f7   :  { %1965 = vmatprep.subr.mxu1 %v2280_v39 }
 0x3f8   :  { %1966 = vmatpush3.msra.mxu1 %v1272_v49 }
 0x3f9   :  { %1967 = vmatprep.subr.mxu1 %v2280_v39 }
 0x3fa   :  { %1968 = vmatpush3.msra.mxu1 %v1271_v50 }
 0x3fb   :  { %1969 = vmatprep.subr.mxu1 %v2280_v39 }
 0x3fc   :  { %1970 = vmatpush3.msra.mxu1 %v1270_v51 }
 0x3fd   :  { %1971 = vmatprep.subr.mxu1 %v2280_v39 }
 0x3fe   :  { %1972 = vmatpush3.msra.mxu1 %v1269_v52 }
 0x3ff   :  { %1973 = vmatprep.subr.mxu1 %v2280_v39 }
 0x400   :  { %1974 = vmatpush3.msra.mxu1 %v1268_v53 }
 0x401   :  { %1975 = vmatprep.subr.mxu1 %v2280_v39 }
 0x402   :  { %1976 = vmatpush3.msra.mxu1 %v1267_v54 }
 0x403   :  { %1977 = vmatprep.subr.mxu1 %v2280_v39 }
 0x404   :  { %1978 = vmatpush3.msra.mxu1 %v1266_v55 }
 0x405   :  { %1979 = vmatprep.subr.mxu1 %v2280_v39 }
 0x406   :  { %1980 = vmatpush3.msra.mxu1 %v1265_v56 }
 0x4a7   :  { %v1064_v40 = vpop.f32.mrf.mxu1 }
 0x4a8   :  { %v1065_v0 = vadd.f32 %v1590_v38, %v1064_v40 }
 0x4a9   :  { %v1913_v41 = vpop.f32.mrf.mxu1 }
 0x4aa   :  { %1947 = vmatmul.mubr.f32.vlgmr.msra.gmra.mxu0 %v1065_v0 }
 0x4ab   :  { %2016 = vmatprep.mubr.msk.f32.mxu0 %vm2281_vm0, %v2280_v39 }
 0x56a   :  { %v1157_v59 = vpop.f32.mrf.mxu0 }
 0x56b   :  { %v2618_v60 = vadd.f32 %v1591_v58, %v1157_v59 }
 0x56c   :  { %v1948_v61 = vpop.f32.mrf.mxu0 }
 0x56d   :  { %v1164_v62 = vand.u32 2139095040, %v2618_v60  ;;  %v1161_v6 = vand.u32 2147483647, %v2618_v60  ;;  %vm1163_vm1 = vcmp.lt.s32.totalorder %v2618_v60, 0  ;;  %vm1253_vm6 = vweird.f32 %v2618_v60 }
 0x56f   :  { %v1165_v1 = vshrl.u32 %v1164_v62, 23  ;;  %v1168_v10 = vand.u32 8388607, %v1161_v6  ;;  %vm1162_vm2 = vcmp.le.f32.partialorder %v1161_v6, 0.7853982 }
 0x571   :  { %v1592_v2 = vadd.s32 4294967169, %v1165_v1  ;;  %v1169_v29 = vor.u32 8388608, %v1168_v10 }
 0x573   :  { %v1171_v4 = vadd.s32 1, %v1592_v2  ;;  %v1209_v40 = vshll.u32 %v1169_v29, 8 }
 0x575   :  { %vm1172_vm0 = vcmp.gt.s32.totalorder %v1171_v4, 0 }
 0x576   :  { %v1173_v7 = vsel %vm1172_vm0, %v1171_v4, 0 }
 0x577   :  { %v1175_v9 = vand.u32 31, %v1173_v7  ;;  %v1174_v12 = vshrl.u32 %v1173_v7, 5 }
 0x579   :  { %v1176_v11 = vsub.s32 32, %v1175_v9  ;;  %v1178_v13 = vshll.u32 %v2285_v23, %v1175_v9  ;;  %v1181_v14 = vshll.u32 %v2286_v25, %v1175_v9  ;;  %v1184_v19 = vshll.u32 %v2287_v28, %v1175_v9 }
 0x57a   :  { %v1187_v22 = vshll.u32 %v2282_v15, %v1175_v9  ;;  %v1190_v26 = vshll.u32 %v2283_v17, %v1175_v9  ;;  %vm1193_vm10 = vcmp.lt.s32.totalorder %v1174_v12, 1  ;;  %vm1196_vm11 = vcmp.lt.s32.totalorder %v1174_v12, 4 }
 0x57b   :  { %v1179_v16 = vshrl.u32 %v2286_v25, %v1176_v11  ;;  %v1182_v18 = vshrl.u32 %v2287_v28, %v1176_v11  ;;  %v1185_v20 = vshrl.u32 %v2282_v15, %v1176_v11  ;;  %v1188_v24 = vshrl.u32 %v2283_v17, %v1176_v11 }
 0x57c   :  { %v1191_v27 = vshrl.u32 %v2284_v21, %v1176_v11  ;;  %v1177_v8 = vshrl.u32 %v2285_v23, %v1176_v11  ;;  %vm1195_vm12 = vcmp.lt.s32.totalorder %v1174_v12, 3  ;;  %vm1194_vm13 = vcmp.lt.s32.totalorder %v1174_v12, 2 }
 0x57d   :  { %v1180_v30 = vor.u32 %v1179_v16, %v1178_v13  ;;  %v1183_v63 = vor.u32 %v1182_v18, %v1181_v14  ;;  %v1186_v31 = vor.u32 %v1185_v20, %v1184_v19  ;;  %v1189_v32 = vor.u32 %v1188_v24, %v1187_v22 }
 0x57e   :  { %v1192_v33 = vor.u32 %v1191_v27, %v1190_v26 }
 0x57f   :  { %v1198_v34 = vsel %vm1196_vm11, %v1186_v31, 2102212464  ;;  %v1201_v35 = vsel %vm1193_vm10, %v1180_v30, %v1183_v63  ;;  %v1205_v57 = vsel %vm1193_vm10, %v1183_v63, %v1186_v31  ;;  %v1202_v36 = vsel %vm1196_vm11, %v1189_v32, 920167782 }
 0x580   :  { %v1206_v37 = vsel %vm1196_vm11, %v1192_v33, 1326507024  ;;  %v1203_v5 = vsel %vm1195_vm12, %v1186_v31, %v1202_v36  ;;  %v1197_v0 = vsel %vm1193_vm10, %v1177_v8, %v1180_v30  ;;  %v1199_v41 = vsel %vm1195_vm12, %v1183_v63, %v1198_v34  ;;  %v1477_v8 = vld [vmem:[#allocation14 + $0x78] sm:$0xff]  ;;  %v1476_v36 = vld [vmem:[#allocation14 + $0x70] sm:$0xff] }
 0x581   :  { %v1207_v38 = vsel %vm1195_vm12, %v1189_v32, %v1206_v37  ;;  %v1204_v42 = vsel %vm1194_vm13, %v1201_v35, %v1203_v5  ;;  %v1200_v47 = vsel %vm1194_vm13, %v1197_v0, %v1199_v41  ;;  %1985 = vmatpush3.msra.mxu0 %v1477_v8  ;;  %v1475_v37 = vld [vmem:[#allocation14 + $0x68] sm:$0xff]  ;;  %v1474_v5 = vld [vmem:[#allocation14 + $0x60] sm:$0xff]  ;;  %v1469_v41 = vld [vmem:[#allocation14 + $0x38] sm:$0xff] }
 0x582   :  { %v1208_v43 = vsel %vm1194_vm13, %v1205_v57, %v1207_v38  ;;  %v2638_v45 = vmul.u32.u64.low %v1209_v40, %v1204_v42  ;;  %v2639_v46 = vmul.u32.u64.high %v1209_v40, %v1204_v42, %v2638_v45  ;;  %v1216_v49 = vmul.u32 %v1209_v40, %v1200_v47  ;;  %1986 = vmatprep.subr.mxu0 %v2280_v39  ;;  %v1472_v38 = vld [vmem:[#allocation14 + $0x50] sm:$0xff]  ;;  %v1470_v0 = vld [vmem:[#allocation14 + $0x40] sm:$0xff] }
 0x583   :  { %v2635_v3 = vmul.u32.u64.low %v1209_v40, %v1208_v43  ;;  %v2636_v44 = vmul.u32.u64.high %v1209_v40, %v1208_v43, %v2635_v3  ;;  %1987 = vmatpush3.msra.mxu0 %v1476_v36  ;;  %v1471_v40 = vld [vmem:[#allocation14 + $0x48] sm:$0xff]  ;;  %v1468_v42 = vld [vmem:[#allocation14 + $0x30] sm:$0xff]  ;;  %v1462_v47 = vld [vmem:[#allocation14] sm:$0xff] }
 0x584   :  { %v1219_v48 = vadd.s32 1, %v2639_v46  ;;  %1988 = vmatprep.subr.mxu0 %v2280_v39  ;;  %v1467_v43 = vld [vmem:[#allocation14 + $0x28] sm:$0xff]  ;;  %v1466_v3 = vld [vmem:[#allocation14 + $0x20] sm:$0xff] }
 0x585   :  { %vm1218_vm14 = vc.u32 %v2636_v44, %v2638_v45  ;;  %v1217_v1 = vadd.s32 %v2638_v45, %v2636_v44  ;;  %1989 = vmatpush3.msra.mxu0 %v1475_v37  ;;  %v1465_v44 = vld [vmem:[#allocation14 + $0x18] sm:$0xff]  ;;  %v1464_v45 = vld [vmem:[#allocation14 + $0x10] sm:$0xff] }
 0x586   :  { %v1220_v50 = vsel %vm1218_vm14, %v1219_v48, %v2639_v46  ;;  %1990 = vmatprep.subr.mxu0 %v2280_v39  ;;  %v1463_v46 = vld [vmem:[#allocation14 + $0x8] sm:$0xff]  ;;  %v1596_v48 = vld [vmem:[%s2718_s12] ss:$0 sm:$0xff] }
 0x587   :  { %v1221_v51 = vadd.s32 %v1220_v50, %v1216_v49  ;;  %1991 = vmatpush3.msra.mxu0 %v1474_v5 }
 0x588   :  { %1992 = vmatprep.subr.mxu0 %v2280_v39 }
 0x589   :  { %v1222_v52 = vadd.s32 536870912, %v1221_v51 }
 0x58b   :  { %v1223_v53 = vshrl.u32 %v1222_v52, 30 }
 0x58d   :  { %v1224_v54 = vshll.u32 %v1223_v53, 30  ;;  %v1247_v20 = vsub.s32 4, %v1223_v53 }
 0x58f   :  { %v1225_v55 = vsub.s32 %v1221_v51, %v1224_v54  ;;  %v1248_v26 = vsel %vm1163_vm1, %v1247_v20, %v1223_v53 }
 0x590   :  { %v1250_v27 = vsel %vm1162_vm2, 0, %v1248_v26 }
 0x591   :  { %v1227_v56 = vsub.s32 0, %v1225_v55  ;;  %v1254_v29 = vadd.s32 3, %v1250_v27 }
 0x593   :  { %v1593_v58 = vmin.u32 %v1227_v56, %v1225_v55  ;;  %v1255_v30 = vand.u32 3, %v1254_v29 }
 0x595   :  { %v1229_v59 = vclz %v1593_v58  ;;  %vm1260_vm3 = vcmp.eq.s32.totalorder %v1255_v30, 2  ;;  %vm1257_vm4 = vcmp.eq.s32.totalorder %v1255_v30, 0  ;;  %vm1256_vm5 = vcmp.lt.s32.totalorder %v1255_v30, 2 }
 0x597   :  { %v1594_v61 = vadd.s32 4294967294, %v1229_v59 }
 0x599   :  { %vm1595_vm15 = vcmp.lt.s32.totalorder %v1594_v61, 0 }
 0x59a   :  { %v1232_v62 = vsel %vm1595_vm15, 0, %v1594_v61 }
 0x59b   :  { %v1233_v2 = vsub.s32 32, %v1232_v62  ;;  %v1237_v4 = vsub.s32 4294967266, %v1232_v62  ;;  %v1234_v7 = vshll.u32 %v1225_v55, %v1232_v62 }
 0x59d   :  { %v1235_v9 = vshrl.u32 %v1217_v1, %v1233_v2  ;;  %v1238_v10 = vadd.s32 127, %v1237_v4 }
 0x59f   :  { %v1236_v11 = vor.u32 %v1235_v9, %v1234_v7  ;;  %v1239_v12 = vshll.u32 %v1238_v10, 23 }
 0x5a1   :  { %v1240_v13 = vor.u32 4788187, %v1239_v12  ;;  %v1243_v16 = vcvt.s32.f32 %v1236_v11 }
 0x5a3   :  { %v1241_v14 = vand.u32 2147483647, %v1240_v13 }
 0x5a5   :  { %v1244_v18 = vmul.f32 %v1243_v16, %v1241_v14 }
 0x5a7   :  { %v1245_v19 = vxor.u32 2147483648, %v1244_v18 }
 0x5a9   :  { %v1246_v22 = vsel %vm1163_vm1, %v1245_v19, %v1244_v18 }
 0x5aa   :  { %v1249_v24 = vsel %vm1162_vm2, %v2618_v60, %v1246_v22  ;;  %v1473_v60 = vld [vmem:[#allocation14 + $0x58] sm:$0xff] }
 0x5ab   :  { %2070 = vcosq.f32 %v1249_v24  ;;  %1993 = vmatpush3.msra.mxu0 %v1473_v60 }
 0x5ac   :  { %2072 = vsinq.f32 %v1249_v24  ;;  %1994 = vmatprep.subr.mxu0 %v2280_v39 }
 0x5ad   :  { %1995 = vmatpush3.msra.mxu0 %v1472_v38 }
 0x5ae   :  { %1996 = vmatprep.subr.mxu0 %v2280_v39 }
 0x5af   :  { %1997 = vmatpush3.msra.mxu0 %v1471_v40 }
 0x5b0   :  { %1998 = vmatprep.subr.mxu0 %v2280_v39 }
 0x5b1   :  { %1999 = vmatpush3.msra.mxu0 %v1470_v0 }
 0x5b2   :  { %2000 = vmatprep.subr.mxu0 %v2280_v39 }
 0x5b3   :  { %2001 = vmatpush3.msra.mxu0 %v1469_v41 }
 0x5b4   :  { %2002 = vmatprep.subr.mxu0 %v2280_v39 }
 0x5b5   :  { %2003 = vmatpush3.msra.mxu0 %v1468_v42 }
 0x5b6   :  { %2004 = vmatprep.subr.mxu0 %v2280_v39 }
 0x5b7   :  { %2005 = vmatpush3.msra.mxu0 %v1467_v43 }
 0x5b8   :  { %v2071_v63 = vpop.eup %2070  ;;  %2006 = vmatprep.subr.mxu0 %v2280_v39 }
 0x5b9   :  { %v2073_v31 = vpop.eup %2072  ;;  %v1261_v32 = vxor.u32 2147483648, %v2071_v63  ;;  %2007 = vmatpush3.msra.mxu0 %v1466_v3 }
 0x5ba   :  { %v1258_v33 = vxor.u32 2147483648, %v2073_v31  ;;  %2008 = vmatprep.subr.mxu0 %v2280_v39 }
 0x5bb   :  { %v1262_v34 = vsel %vm1260_vm3, %v1261_v32, %v2073_v31  ;;  %2009 = vmatpush3.msra.mxu0 %v1465_v44 }
 0x5bc   :  { %v1259_v35 = vsel %vm1257_vm4, %v2071_v63, %v1258_v33  ;;  %2010 = vmatprep.subr.mxu0 %v2280_v39 }
 0x5bd   :  { %v1263_v6 = vsel %vm1256_vm5, %v1259_v35, %v1262_v34  ;;  %2011 = vmatpush3.msra.mxu0 %v1464_v45 }
 0x5be   :  { %v1264_v57 = vsel %vm1253_vm6, nan, %v1263_v6  ;;  %2012 = vmatprep.subr.mxu0 %v2280_v39 }
 0x5bf   :  { %1982 = vmatmul.mubr.f32.vlgmr.msra.gmra.mxu1 %v1264_v57  ;;  %2013 = vmatpush3.msra.mxu0 %v1463_v46 }
 0x5c0   :  { %2014 = vmatprep.subr.mxu0 %v2280_v39 }
 0x5c1   :  { %2015 = vmatpush3.msra.mxu0 %v1462_v47 }
 0x67f   :  { %v1354_v49 = vpop.f32.mrf.mxu1 }
 0x680   :  { %v2668_v50 = vadd.f32 %v1596_v48, %v1354_v49 }
 0x681   :  { %v1983_v51 = vpop.f32.mrf.mxu1 }
 0x682   :  { %v1361_v52 = vand.u32 2139095040, %v2668_v50  ;;  %v1358_v56 = vand.u32 2147483647, %v2668_v50  ;;  %vm1360_vm13 = vcmp.lt.s32.totalorder %v2668_v50, 0  ;;  %vm1450_vm3 = vweird.f32 %v2668_v50 }
 0x684   :  { %v1362_v53 = vshrl.u32 %v1361_v52, 23  ;;  %v1365_v39 = vand.u32 8388607, %v1358_v56  ;;  %vm1359_vm14 = vcmp.le.f32.partialorder %v1358_v56, 0.7853982 }
 0x686   :  { %v1597_v54 = vadd.s32 4294967169, %v1362_v53  ;;  %v1366_v16 = vor.u32 8388608, %v1365_v39 }
 0x688   :  { %v1368_v55 = vadd.s32 1, %v1597_v54 }
 0x68a   :  { %vm1369_vm7 = vcmp.gt.s32.totalorder %v1368_v55, 0 }
 0x68b   :  { %v1370_v58 = vsel %vm1369_vm7, %v1368_v55, 0 }
 0x68c   :  { %v1372_v59 = vand.u32 31, %v1370_v58  ;;  %v1371_v62 = vshrl.u32 %v1370_v58, 5 }
 0x68e   :  { %v1373_v61 = vsub.s32 32, %v1372_v59  ;;  %v1375_v1 = vshll.u32 %v2285_v23, %v1372_v59  ;;  %v1378_v2 = vshll.u32 %v2286_v25, %v1372_v59  ;;  %v1381_v9 = vshll.u32 %v2287_v28, %v1372_v59 }
 0x68f   :  { %v1384_v11 = vshll.u32 %v2282_v15, %v1372_v59  ;;  %v1387_v13 = vshll.u32 %v2283_v17, %v1372_v59  ;;  %vm1390_vm8 = vcmp.lt.s32.totalorder %v1371_v62, 1  ;;  %vm1393_vm9 = vcmp.lt.s32.totalorder %v1371_v62, 4 }
 0x690   :  { %v1376_v4 = vshrl.u32 %v2286_v25, %v1373_v61  ;;  %v1379_v7 = vshrl.u32 %v2287_v28, %v1373_v61  ;;  %v1382_v10 = vshrl.u32 %v2282_v15, %v1373_v61  ;;  %v1385_v12 = vshrl.u32 %v2283_v17, %v1373_v61 }
 0x691   :  { %v1388_v14 = vshrl.u32 %v2284_v21, %v1373_v61  ;;  %v1374_v27 = vshrl.u32 %v2285_v23, %v1373_v61  ;;  %vm1392_vm0 = vcmp.lt.s32.totalorder %v1371_v62, 3  ;;  %vm1391_vm10 = vcmp.lt.s32.totalorder %v1371_v62, 2 }
 0x692   :  { %v1377_v18 = vor.u32 %v1376_v4, %v1375_v1  ;;  %v1380_v19 = vor.u32 %v1379_v7, %v1378_v2  ;;  %v1383_v20 = vor.u32 %v1382_v10, %v1381_v9  ;;  %v1386_v22 = vor.u32 %v1385_v12, %v1384_v11 }
 0x693   :  { %v1389_v25 = vor.u32 %v1388_v14, %v1387_v13  ;;  %v1406_v21 = vshll.u32 %v1366_v16, 8 }
 0x694   :  { %v1395_v24 = vsel %vm1393_vm9, %v1383_v20, 2102212464  ;;  %v1398_v28 = vsel %vm1390_vm8, %v1377_v18, %v1380_v19  ;;  %v1402_v26 = vsel %vm1390_vm8, %v1380_v19, %v1383_v20  ;;  %v1399_v15 = vsel %vm1393_vm9, %v1386_v22, 920167782 }
 0x695   :  { %v1403_v29 = vsel %vm1393_vm9, %v1389_v25, 1326507024  ;;  %v1400_v17 = vsel %vm1392_vm0, %v1383_v20, %v1399_v15  ;;  %v1394_v63 = vsel %vm1390_vm8, %v1374_v27, %v1377_v18  ;;  %v1396_v31 = vsel %vm1392_vm0, %v1380_v19, %v1395_v24  ;;  %v1601_v19 = vld [vmem:[%s2720_s14] ss:$0 sm:$0xff] }
 0x696   :  { %v1404_v30 = vsel %vm1392_vm0, %v1386_v22, %v1403_v29  ;;  %v1401_v32 = vsel %vm1391_vm10, %v1398_v28, %v1400_v17  ;;  %v1397_v8 = vsel %vm1391_vm10, %v1394_v63, %v1396_v31 }
 0x697   :  { %v1405_v33 = vsel %vm1391_vm10, %v1402_v26, %v1404_v30  ;;  %v2688_v6 = vmul.u32.u64.low %v1406_v21, %v1401_v32  ;;  %v2689_v57 = vmul.u32.u64.high %v1406_v21, %v1401_v32, %v2688_v6  ;;  %v1413_v36 = vmul.u32 %v1406_v21, %v1397_v8 }
 0x698   :  { %v2685_v34 = vmul.u32.u64.low %v1406_v21, %v1405_v33  ;;  %v2686_v35 = vmul.u32.u64.high %v1406_v21, %v1405_v33, %v2685_v34 }
 0x699   :  { %v1416_v23 = vadd.s32 1, %v2689_v57 }
 0x69a   :  { %vm1415_vm11 = vc.u32 %v2686_v35, %v2688_v6  ;;  %v1414_v45 = vadd.s32 %v2688_v6, %v2686_v35 }
 0x69b   :  { %v1417_v37 = vsel %vm1415_vm11, %v1416_v23, %v2689_v57 }
 0x69c   :  { %v1418_v5 = vadd.s32 %v1417_v37, %v1413_v36 }
 0x69e   :  { %v1419_v60 = vadd.s32 536870912, %v1418_v5 }
 0x6a0   :  { %v1420_v38 = vshrl.u32 %v1419_v60, 30 }
 0x6a2   :  { %v1421_v40 = vshll.u32 %v1420_v38, 30  ;;  %v1444_v61 = vsub.s32 4, %v1420_v38 }
 0x6a4   :  { %v1422_v0 = vsub.s32 %v1418_v5, %v1421_v40  ;;  %v1445_v2 = vsel %vm1360_vm13, %v1444_v61, %v1420_v38 }
 0x6a5   :  { %v1447_v4 = vsel %vm1359_vm14, 0, %v1445_v2 }
 0x6a6   :  { %v1424_v41 = vsub.s32 0, %v1422_v0  ;;  %v1451_v7 = vadd.s32 3, %v1447_v4 }
 0x6a8   :  { %v1598_v42 = vmin.u32 %v1424_v41, %v1422_v0  ;;  %v1452_v9 = vand.u32 3, %v1451_v7 }
 0x6aa   :  { %v1426_v43 = vclz %v1598_v42  ;;  %vm1457_vm15 = vcmp.eq.s32.totalorder %v1452_v9, 2  ;;  %vm1454_vm1 = vcmp.eq.s32.totalorder %v1452_v9, 0  ;;  %vm1453_vm2 = vcmp.lt.s32.totalorder %v1452_v9, 2 }
 0x6ac   :  { %v1599_v3 = vadd.s32 4294967294, %v1426_v43 }
 0x6ae   :  { %vm1600_vm12 = vcmp.lt.s32.totalorder %v1599_v3, 0 }
 0x6af   :  { %v1429_v44 = vsel %vm1600_vm12, 0, %v1599_v3 }
 0x6b0   :  { %v1430_v46 = vsub.s32 32, %v1429_v44  ;;  %v1434_v47 = vsub.s32 4294967266, %v1429_v44  ;;  %v1431_v48 = vshll.u32 %v1422_v0, %v1429_v44 }
 0x6b2   :  { %v1432_v49 = vshrl.u32 %v1414_v45, %v1430_v46  ;;  %v1435_v51 = vadd.s32 127, %v1434_v47 }
 0x6b4   :  { %v1433_v52 = vor.u32 %v1432_v49, %v1431_v48  ;;  %v1436_v53 = vshll.u32 %v1435_v51, 23 }
 0x6b6   :  { %v1437_v54 = vor.u32 4788187, %v1436_v53  ;;  %v1440_v58 = vcvt.s32.f32 %v1433_v52 }
 0x6b8   :  { %v1438_v55 = vand.u32 2147483647, %v1437_v54 }
 0x6ba   :  { %v1441_v59 = vmul.f32 %v1440_v58, %v1438_v55 }
 0x6bc   :  { %v1442_v39 = vxor.u32 2147483648, %v1441_v59 }
 0x6be   :  { %v1443_v62 = vsel %vm1360_vm13, %v1442_v39, %v1441_v59 }
 0x6bf   :  { %v1446_v1 = vsel %vm1359_vm14, %v2668_v50, %v1443_v62 }
 0x6c0   :  { %2074 = vcosq.f32 %v1446_v1 }
 0x6c1   :  { %2076 = vsinq.f32 %v1446_v1 }
 0x6cd   :  { %v2075_v10 = vpop.eup %2074 }
 0x6ce   :  { %v2077_v11 = vpop.eup %2076  ;;  %v1458_v12 = vxor.u32 2147483648, %v2075_v10 }
 0x6cf   :  { %v1455_v13 = vxor.u32 2147483648, %v2077_v11 }
 0x6d0   :  { %v1459_v14 = vsel %vm1457_vm15, %v1458_v12, %v2077_v11 }
 0x6d1   :  { %v1456_v16 = vsel %vm1454_vm1, %v2075_v10, %v1455_v13 }
 0x6d2   :  { %v1460_v56 = vsel %vm1453_vm2, %v1456_v16, %v1459_v14 }
 0x6d3   :  { %v1461_v18 = vsel %vm1450_vm3, nan, %v1460_v56 }
 0x6d4   :  { %2017 = vmatmul.mubr.f32.vlgmr.msra.gmra.mxu0 %v1461_v18 }
 0x794   :  { %v1551_v20 = vpop.f32.mrf.mxu0 }
 0x795   :  { %v1552_v22 = vadd.f32 %v1601_v19, %v1551_v20 }
 0x796   :  { %v2018_v25 = vpop.f32.mrf.mxu0 }
 0x797   :  { %1555 = vst [vmem:[#allocation16] sm:$0xff] %v1552_v22 }
 0x798   :  { %2249 = shalt.err (!%p2246_p2)
}
 0x799   :  { %1565 = dma.vmem_to_hbm [thread:$0]  %s1563_s30, 128, %s2721_s15, [#allocation4]  }
 0x79a   :  { %2268 = dma.done.wait [#allocation4], 128  }
 0x79b   :  { %2269 = vsyncadd [#allocation4], 4294967168 }
 0x79c   :  { %1569 = vsyncpa [#allocation3], 1 }
 0x79d   :  { %1570 = vsyncpa [#allocation6], 1 }
 0x79e   :  { %1571 = vsyncpa [#allocation9], 1 }
 0x79f   :  { %1572 = vsyncpa [#allocation12], 1 }
 0x7a0   :  { %1573 = vsyncpa [#allocation15], 1 }
 0x7a1   :  { %1574 = vsyncpa [#allocation4], 1 }

</bundles_post_ra>
